<compile_context>
chip_gen: v6e
topology: v6e:2x2x1
jax: 0.10.0
libtpu: 0.0.40
codegen_flags: <defaults>
</compile_context>

<pallas_src>
import functools
import math

import numpy as np

import jax
import jax.numpy as jnp
from jax import lax
from jax.experimental import pallas as pl
from jax.experimental.pallas import tpu as pltpu

EPS = 1e-5


# --------------------------------- kernel ------------------------------------
def _autoenc_kernel(x_ref, cond_ref, omask_ref, pslab_ref, z_out_ref, x_out_ref,
                    *, B, T, C4, P, Tseg, L, kernel_sizes, dilations, pmeta):
    f32 = jnp.float32

    # Segment indicators built on the VPU from iota (no DMA, no VMEM residents):
    #   segT[b, l] = 1  iff lane l is a *valid* time position of batch b.
    lane_bl = lax.broadcasted_iota(jnp.int32, (B, L), 1)
    start_bl = lax.broadcasted_iota(jnp.int32, (B, L), 0) * Tseg + P
    segT = ((lane_bl >= start_bl) & (lane_bl < start_bl + T)).astype(f32)     # (B, L)
    lane_lb = lax.broadcasted_iota(jnp.int32, (L, B), 0)
    start_lb = lax.broadcasted_iota(jnp.int32, (L, B), 1) * Tseg + P
    seg = ((lane_lb >= start_lb) & (lane_lb < start_lb + T)).astype(f32)      # (L, B)
    vmask = jnp.sum(segT, axis=0, keepdims=True)                              # (1, L)

    omask = omask_ref[...]                                                    # (1, L)
    cond = cond_ref[...]                                                      # (S, B)

    # ---- unpack the single packed parameter slab via static sub-slices ----
    pit = iter(pmeta)

    def nextp():
        o, r, c = next(pit)
        return pslab_ref[o:o + r, 0:c]

    enc0_w = nextp(); enc0_b = nextp()
    enc_res = [(nextp(), nextp()) for _ in kernel_sizes]
    encout_w = nextp(); encout_b = nextp()
    dec0_w = nextp(); dec0_b = nextp()
    dec_res = [tuple(nextp() for _ in range(6)) for _ in kernel_sizes]
    out_w = nextp(); out_b = nextp()

    inv_T = 1.0 / float(T)
    inv_BT = 1.0 / float(B * T)

    def conv(x, w2, b, ksize, dil, cin):
        """Dilated Conv1d on the (Cin, L) slab -> (Cout, L).

        K taps are shifted views produced by pltpu.roll (XLU) on the resident
        slab and accumulated with per-tap MXU matmuls (no im2col temp, no
        scratch slab).  Wraparound only moves zeros: every segment carries
        >= P leading and >= P trailing zero lanes."""
        if ksize == 1:
            return jnp.dot(w2, x, preferred_element_type=f32) + b
        pad = (ksize - 1) // 2 * dil
        acc = None
        for k in range(ksize):
            shift = (pad - k * dil) % L           # nonnegative, roll is periodic
            tap = x if shift == 0 else pltpu.roll(x, shift=shift, axis=1)
            contrib = jnp.dot(w2[:, k * cin:(k + 1) * cin], tap,
                              preferred_element_type=f32)
            acc = contrib if acc is None else acc + contrib
        return acc + b

    def instance_norm_relu(y):
        """InstanceNorm1d (affine=False) per (channel, batch) over valid time, + ReLU.

        One-pass stats: a single matmul gives stacked [sum(y); sum(y*y)] per
        batch, a single matmul broadcasts [mean; rsqrt(var+eps)] back to lanes.
        Broadcast factors are 0 on invalid lanes, so the result is exactly 0
        there (keeps the per-segment zero-padding invariant)."""
        stats = jnp.dot(jnp.concatenate([y, y * y], axis=0), seg,
                        preferred_element_type=f32) * inv_T                   # (2C, B)
        mean = stats[:C4]
        var = jnp.maximum(stats[C4:] - mean * mean, 0.0)
        bc = jnp.dot(jnp.concatenate([mean, lax.rsqrt(var + EPS)], axis=0),
                     segT, preferred_element_type=f32)                        # (2C, L)
        return jnp.maximum((y - bc[:C4]) * bc[C4:], 0.0)

    def batch_norm_relu(y, gamma, beta):
        """BatchNorm1d (training-mode stats over batch x valid time), + ReLU.
        Single stacked lane-reduce for [sum; sum of squares]."""
        ym = y * vmask
        s = jnp.sum(jnp.concatenate([ym, ym * ym], axis=0), axis=1,
                    keepdims=True) * inv_BT                                   # (2C, 1)
        mean = s[:C4]
        var = jnp.maximum(s[C4:] - mean * mean, 0.0)
        scale = lax.rsqrt(var + EPS) * gamma
        return jnp.maximum((y - mean) * scale + beta, 0.0)

    # ---------------- encoder ----------------
    E = x_ref.shape[0]
    x = x_ref[...]
    h = jnp.maximum(conv(x, enc0_w, enc0_b, 3, 1, E), 0.0) * vmask
    for (rw, rb), ks, dil in zip(enc_res, kernel_sizes, dilations):
        h = h + instance_norm_relu(conv(h, rw, rb, ks, dil, C4))

    z = jnp.dot(encout_w, h, preferred_element_type=f32) + encout_b           # (H, L)
    # Early, lane-dense, masked writeback of z (decoder only needs it for the
    # first 1x1 conv below, so nothing keeps it live afterwards).
    z_out_ref[...] = (z * omask).astype(z_out_ref.dtype)

    # ---------------- decoder ----------------
    g = jnp.maximum(jnp.dot(dec0_w, z, preferred_element_type=f32) + dec0_b,
                    0.0) * vmask
    rev = list(zip(reversed(kernel_sizes), reversed(dilations)))
    for (cw, cb, rw, rb, gamma, beta), (ks, dil) in zip(dec_res, rev):
        # cond path: Conv1d(k=1) on (B, S, 1) == one matmul; single broadcast
        # matmul to lanes (0 on invalid lanes), then row-slice (cond_b, cond_a).
        zc = jnp.maximum(
            jnp.dot(cw, cond, preferred_element_type=f32) + cb, 0.0)          # (2*C4, B)
        zl = jnp.dot(zc, segT, preferred_element_type=f32)                    # (2*C4, L)
        xc = zl[C4:] * g + zl[:C4]
        y = conv(xc, rw, rb, ks, dil, C4)
        g = (xc + batch_norm_relu(y, gamma, beta)) * vmask

    rec = jnp.dot(out_w, g, preferred_element_type=f32) + out_b               # (E, L)
    x_out_ref[...] = (rec * omask).astype(x_out_ref.dtype)


# ------------------------------ params / wrapper ------------------------------
def init_params(key, input_channel, hidden_channel, cond_channel,
                kernel_sizes, dilations):
    """Deterministic synthetic parameters in PyTorch Conv1d layout (Cout, Cin, K)."""
    del dilations
    C4 = input_channel // 4
    keys = iter(jax.random.split(key, 64))

    def conv_w(cout, cin, k):
        return 0.2 * jax.random.normal(next(keys), (cout, cin, k), jnp.float32)

    def vec(c):
        return 0.1 * jax.random.normal(next(keys), (c,), jnp.float32)

    p = {}
    p["enc0_w"], p["enc0_b"] = conv_w(C4, input_channel, 3), vec(C4)
    p["enc_res"] = [(conv_w(C4, C4, ks), vec(C4)) for ks in kernel_sizes]
    p["encout_w"], p["encout_b"] = conv_w(hidden_channel, C4, 1), vec(hidden_channel)
    p["dec0_w"], p["dec0_b"] = conv_w(C4, hidden_channel, 1), vec(C4)
    p["dec_res"] = []
    for ks in reversed(kernel_sizes):
        cw = 0.2 * jax.random.normal(next(keys), (2 * C4, cond_channel), jnp.float32)
        cb = vec(2 * C4)
        w, b = conv_w(C4, C4, ks), vec(C4)
        gamma = 1.0 + 0.1 * jax.random.normal(next(keys), (C4,), jnp.float32)
        beta = 0.1 * jax.random.normal(next(keys), (C4,), jnp.float32)
        p["dec_res"].append((cw, cb, w, b, gamma, beta))
    p["out_w"], p["out_b"] = conv_w(input_channel, C4, 1), vec(input_channel)
    return p


def _to_matmul_weight(w):
    """(Cout, Cin, K) PyTorch Conv1d weight -> (Cout, K*Cin) per-tap matrix."""
    cout, cin, k = w.shape
    return jnp.transpose(w, (0, 2, 1)).reshape(cout, k * cin)


def autoencoder_forward(params, content, condition, mask, kernel_sizes, dilations):
    """content: (B,T,E) f32; condition: (B,S) f32; mask: (B,T) bool (True => zeroed).

    Returns (z: (B,T,H), reconstruction: (B,T,E)), matching AutoEncoder.forward."""
    B, T, E = content.shape
    C4 = E // 4
    H = params["encout_w"].shape[0]

    # Per-segment zero pad P covers the largest conv half-receptive-field; Tseg is
    # chosen so the folded lane extent L = B * Tseg is a multiple of 128 and every
    # segment keeps >= P leading and trailing zero lanes (needed by roll taps).
    pads = [1] + [(k - 1) // 2 * d for k, d in zip(kernel_sizes, dilations)]
    P = max(pads)
    step = 128 // math.gcd(B, 128)
    Tseg = -(-(T + 2 * P) // step) * step
    L = B * Tseg

    # content (B,T,E) -> (E, B*Tseg) slab with [P | T | rest] zero-padded segments.
    x = jnp.transpose(content.astype(jnp.float32), (2, 0, 1))              # (E, B, T)
    x_slab = jnp.pad(x, ((0, 0), (0, 0), (P, Tseg - P - T))).reshape(E, L)

    # Output keep-mask on the slab lanes (0 outside valid range and on masked pos).
    keep_slab = jnp.pad(jnp.logical_not(mask), ((0, 0), (P, Tseg - P - T)),
                        constant_values=False).reshape(1, L).astype(jnp.float32)

    cond_sb = jnp.transpose(condition.astype(jnp.float32), (1, 0))          # (S, B)

    # ---- pack every weight / bias / gamma / beta into ONE (rows, W) f32 slab ----
    def col(v):
        return v.astype(jnp.float32).reshape(-1, 1)

    plist = [_to_matmul_weight(params["enc0_w"]), col(params["enc0_b"])]
    for w, b in params["enc_res"]:
        plist += [_to_matmul_weight(w), col(b)]
    plist += [_to_matmul_weight(params["encout_w"]), col(params["encout_b"]),
              _to_matmul_weight(params["dec0_w"]), col(params["dec0_b"])]
    for cw, cb, w, b, gamma, beta in params["dec_res"]:
        plist += [cw.astype(jnp.float32), col(cb), _to_matmul_weight(w), col(b),
                  col(gamma), col(beta)]
    plist += [_to_matmul_weight(params["out_w"]), col(params["out_b"])]

    max_w = max(a.shape[1] for a in plist)
    slab_w = max(128, -(-max_w // 128) * 128)
    pmeta, off = [], 0
    for a in plist:
        r, c = a.shape
        pmeta.append((off, r, c))
        off += -(-r // 8) * 8                                # 8-row aligned offsets
    rows = max(off, 8)
    pslab_np = np.zeros((rows, slab_w), np.float32)
    for a, (o, r, c) in zip(plist, pmeta):
        pslab_np[o:o + r, :c] = np.asarray(a)
    pslab = jnp.asarray(pslab_np)

    kernel = functools.partial(
        _autoenc_kernel, B=B, T=T, C4=C4, P=P, Tseg=Tseg, L=L,
        kernel_sizes=tuple(kernel_sizes), dilations=tuple(dilations),
        pmeta=tuple(pmeta))

    operands = (x_slab, cond_sb, keep_slab, pslab)
    operand_bytes = sum(int(a.size) * a.dtype.itemsize for a in operands)
    out_bytes = (H + E) * L * 4
    # Derive the VMEM budget from real buffer sizes (8x headroom for in-kernel
    # temporaries); stays well within v7x's 64 MiB physical VMEM.
    vmem_limit = int(min(max(8 * (operand_bytes + out_bytes), 16 << 20), 100 << 20))

    vspec = pl.BlockSpec(memory_space=pltpu.MemorySpace.VMEM)
    z_slab, rec_slab = pl.pallas_call(
        kernel,
        out_shape=(jax.ShapeDtypeStruct((H, L), jnp.float32),
                   jax.ShapeDtypeStruct((E, L), jnp.float32)),
        in_specs=[vspec] * len(operands),
        out_specs=(vspec, vspec),
        compiler_params=pltpu.CompilerParams(vmem_limit_bytes=vmem_limit),
    )(*operands)

    # Slab -> module output layout (B, T, C). In a larger model these reshapes /
    # transposes would be avoided by keeping the slab layout across adjacent ops.
    z = jnp.transpose(z_slab.reshape(H, B, Tseg)[:, :, P:P + T], (1, 2, 0))
    rec = jnp.transpose(rec_slab.reshape(E, B, Tseg)[:, :, P:P + T], (1, 2, 0))
    return z, rec


# --------------------------- pure-JAX reference --------------------------------
def reference_forward(params, content, condition, mask, kernel_sizes, dilations):
    """Straightforward per-batch pure-JAX mirror of AutoEncoder.forward (no Pallas)."""
    B, T, E = content.shape
    C4 = E // 4
    hi = jax.lax.Precision.HIGHEST
    relu = jax.nn.relu

    def conv1d(x, w, b, d):               # x: (Cin,T), w: (Cout,Cin,K), b: (Cout,)
        cout, cin, k = w.shape
        pad = (k - 1) // 2 * d
        xp = jnp.pad(x, ((0, 0), (pad, pad)))
        acc = jnp.zeros((cout, T), jnp.float32)
        for kk in range(k):
            acc = acc + jnp.dot(w[:, :, kk],
                                lax.slice(xp, (0, kk * d), (cin, kk * d + T)),
                                precision=hi)
        return acc + b[:, None]

    def inorm(x):
        m = jnp.mean(x, axis=1, keepdims=True)
        v = jnp.mean((x - m) ** 2, axis=1, keepdims=True)
        return (x - m) * lax.rsqrt(v + EPS)

    cond_sb = condition.T.astype(jnp.float32)
    zs, hs = [], []
    for bi in range(B):
        x = content[bi].T.astype(jnp.float32)
        h = relu(conv1d(x, params["enc0_w"], params["enc0_b"], 1))
        for (w, b), ks, d in zip(params["enc_res"], kernel_sizes, dilations):
            h = h + relu(inorm(conv1d(h, w, b, d)))
        z = conv1d(h, params["encout_w"], params["encout_b"], 1)
        zs.append(z)
        hs.append(relu(conv1d(z, params["dec0_w"], params["dec0_b"], 1)))

    rev = list(zip(reversed(kernel_sizes), reversed(dilations)))
    for (cw, cb, w, b, gamma, beta), (ks, d) in zip(params["dec_res"], rev):
        zc = relu(jnp.dot(cw, cond_sb, precision=hi) + cb[:, None])        # (2*C4, B)
        xs = [zc[C4:, bi:bi + 1] * hs[bi] + zc[:C4, bi:bi + 1] for bi in range(B)]
        ys = [conv1d(xs[bi], w, b, d) for bi in range(B)]
        ycat = jnp.concatenate(ys, axis=1)
        m = jnp.mean(ycat, axis=1, keepdims=True)
        v = jnp.mean((ycat - m) ** 2, axis=1, keepdims=True)
        scale = lax.rsqrt(v + EPS) * gamma[:, None]
        hs = [xs[bi] + relu((ys[bi] - m) * scale + beta[:, None]) for bi in range(B)]

    keep = jnp.logical_not(mask).astype(jnp.float32)                       # (B, T)
    z_out, x_out = [], []
    for bi in range(B):
        rec = conv1d(hs[bi], params["out_w"], params["out_b"], 1)
        z_out.append((zs[bi] * keep[bi][None, :]).T)
        x_out.append((rec * keep[bi][None, :]).T)
    return jnp.stack(z_out), jnp.stack(x_out)


# ----------------------------------- main -------------------------------------
if __name__ == "__main__":
    B, T = 2, 16
    input_channel, hidden_channel, cond_channel = 16, 8, 6
    kernel_sizes, dilations = [3, 3], [1, 2]

    key = jax.random.PRNGKey(0)
    kp, kc, kd, km = jax.random.split(key, 4)
    params = init_params(kp, input_channel, hidden_channel, cond_channel,
                         kernel_sizes, dilations)
    content = jax.random.normal(kc, (B, T, input_channel), jnp.float32)
    condition = jax.random.normal(kd, (B, cond_channel), jnp.float32)
    mask = jax.random.bernoulli(km, 0.2, (B, T))          # True => zeroed position

    z, rec = autoencoder_forward(params, content, condition, mask,
                                 kernel_sizes, dilations)
    jax.block_until_ready((z, rec))

    assert z.shape == (B, T, hidden_channel)
    assert rec.shape == (B, T, input_channel)
    assert bool(jnp.all(jnp.isfinite(z))) and bool(jnp.all(jnp.isfinite(rec)))
    # masked positions must be exactly zero in both outputs
    assert bool(jnp.all(jnp.where(mask[:, :, None], z, 0.0) == 0.0))
    assert bool(jnp.all(jnp.where(mask[:, :, None], rec, 0.0) == 0.0))

    # Structural cross-check against the pure-JAX reference (tolerance is loose on
    # purpose: MXU matmul precision and the one-pass variance differ from the XLA
    # reference; any layout / conv / norm wiring bug would produce O(1) errors).
    z_ref, rec_ref = reference_forward(params, content, condition, mask,
                                       kernel_sizes, dilations)
    assert bool(jnp.allclose(z, z_ref, atol=5e-2, rtol=5e-2))
    assert bool(jnp.allclose(rec, rec_ref, atol=5e-2, rtol=5e-2))

    print("KERNEL_OK")
</pallas_src>

<mosaic_0001>
module attributes {stable_mosaic.version = 11 : i64} {
  func.func @_autoenc_kernel(%arg0: memref<16x128xf32, #tpu.memory_space<vmem>>, %arg1: memref<6x2xf32, #tpu.memory_space<vmem>>, %arg2: memref<1x128xf32, #tpu.memory_space<vmem>>, %arg3: memref<208x128xf32, #tpu.memory_space<vmem>>, %arg4: memref<8x128xf32, #tpu.memory_space<vmem>>, %arg5: memref<16x128xf32, #tpu.memory_space<vmem>>) attributes {dimension_semantics = [], scalar_prefetch = 0 : i64, scratch_operands = 0 : i64, tpu.core_type = #tpu.core_type<tc>} {
    %0 = tpu.iota {dimensions = array<i32: 1>} : vector<2x128xi32>
    %1 = tpu.iota {dimensions = array<i32: 0>} : vector<2x128xi32>
    %c64_i32 = arith.constant 64 : i32
    %2 = vector.broadcast %c64_i32 : i32 to vector<2x128xi32>
    %3 = arith.muli %1, %2 : vector<2x128xi32>
    %c2_i32 = arith.constant 2 : i32
    %4 = vector.broadcast %c2_i32 : i32 to vector<2x128xi32>
    %5 = arith.addi %3, %4 : vector<2x128xi32>
    %6 = arith.cmpi sge, %0, %5 : vector<2x128xi32>
    %c16_i32 = arith.constant 16 : i32
    %7 = vector.broadcast %c16_i32 : i32 to vector<2x128xi32>
    %8 = arith.addi %5, %7 : vector<2x128xi32>
    %9 = arith.cmpi slt, %0, %8 : vector<2x128xi32>
    %10 = arith.andi %6, %9 : vector<2x128xi1>
    %11 = arith.extui %10 : vector<2x128xi1> to vector<2x128xi32>
    %12 = arith.sitofp %11 : vector<2x128xi32> to vector<2x128xf32>
    %13 = tpu.iota {dimensions = array<i32: 0>} : vector<128x2xi32>
    %14 = tpu.iota {dimensions = array<i32: 1>} : vector<128x2xi32>
    %c64_i32_0 = arith.constant 64 : i32
    %15 = vector.broadcast %c64_i32_0 : i32 to vector<128x2xi32>
    %16 = arith.muli %14, %15 : vector<128x2xi32>
    %c2_i32_1 = arith.constant 2 : i32
    %17 = vector.broadcast %c2_i32_1 : i32 to vector<128x2xi32>
    %18 = arith.addi %16, %17 : vector<128x2xi32>
    %19 = arith.cmpi sge, %13, %18 : vector<128x2xi32>
    %c16_i32_2 = arith.constant 16 : i32
    %20 = vector.broadcast %c16_i32_2 : i32 to vector<128x2xi32>
    %21 = arith.addi %18, %20 : vector<128x2xi32>
    %22 = arith.cmpi slt, %13, %21 : vector<128x2xi32>
    %23 = arith.andi %19, %22 : vector<128x2xi1>
    %24 = arith.extui %23 : vector<128x2xi1> to vector<128x2xi32>
    %25 = arith.sitofp %24 : vector<128x2xi32> to vector<128x2xf32>
    %cst = arith.constant dense<0.000000e+00> : vector<128xf32>
    %26 = vector.multi_reduction <add>, %12, %cst [0] : vector<2x128xf32> to vector<128xf32>
    %27 = vector.shape_cast %26 : vector<128xf32> to vector<1x128xf32>
    %c0 = arith.constant 0 : index
    %c0_3 = arith.constant 0 : index
    %28 = vector.load %arg2[%c0, %c0_3] : memref<1x128xf32, #tpu.memory_space<vmem>>, vector<1x128xf32>
    %c0_4 = arith.constant 0 : index
    %c0_5 = arith.constant 0 : index
    %29 = vector.load %arg1[%c0_4, %c0_5] : memref<6x2xf32, #tpu.memory_space<vmem>>, vector<6x2xf32>
    %c0_6 = arith.constant 0 : index
    %c0_7 = arith.constant 0 : index
    %30 = vector.load %arg3[%c0_6, %c0_7] : memref<208x128xf32, #tpu.memory_space<vmem>>, vector<4x48xf32>
    %c8 = arith.constant 8 : index
    %c0_8 = arith.constant 0 : index
    %31 = vector.load %arg3[%c8, %c0_8] : memref<208x128xf32, #tpu.memory_space<vmem>>, vector<4x1xf32>
    %c16 = arith.constant 16 : index
    %c0_9 = arith.constant 0 : index
    %32 = vector.load %arg3[%c16, %c0_9] : memref<208x128xf32, #tpu.memory_space<vmem>>, vector<4x12xf32>
    %c24 = arith.constant 24 : index
    %c0_10 = arith.constant 0 : index
    %33 = vector.load %arg3[%c24, %c0_10] : memref<208x128xf32, #tpu.memory_space<vmem>>, vector<4x1xf32>
    %c32 = arith.constant 32 : index
    %c0_11 = arith.constant 0 : index
    %34 = vector.load %arg3[%c32, %c0_11] : memref<208x128xf32, #tpu.memory_space<vmem>>, vector<4x12xf32>
    %c40 = arith.constant 40 : index
    %c0_12 = arith.constant 0 : index
    %35 = vector.load %arg3[%c40, %c0_12] : memref<208x128xf32, #tpu.memory_space<vmem>>, vector<4x1xf32>
    %c48 = arith.constant 48 : index
    %c0_13 = arith.constant 0 : index
    %36 = vector.load %arg3[%c48, %c0_13] : memref<208x128xf32, #tpu.memory_space<vmem>>, vector<8x4xf32>
    %c56 = arith.constant 56 : index
    %c0_14 = arith.constant 0 : index
    %37 = vector.load %arg3[%c56, %c0_14] : memref<208x128xf32, #tpu.memory_space<vmem>>, vector<8x1xf32>
    %c64 = arith.constant 64 : index
    %c0_15 = arith.constant 0 : index
    %38 = vector.load %arg3[%c64, %c0_15] : memref<208x128xf32, #tpu.memory_space<vmem>>, vector<4x8xf32>
    %c72 = arith.constant 72 : index
    %c0_16 = arith.constant 0 : index
    %39 = vector.load %arg3[%c72, %c0_16] : memref<208x128xf32, #tpu.memory_space<vmem>>, vector<4x1xf32>
    %c80 = arith.constant 80 : index
    %c0_17 = arith.constant 0 : index
    %40 = vector.load %arg3[%c80, %c0_17] : memref<208x128xf32, #tpu.memory_space<vmem>>, vector<8x6xf32>
    %c88 = arith.constant 88 : index
    %c0_18 = arith.constant 0 : index
    %41 = vector.load %arg3[%c88, %c0_18] : memref<208x128xf32, #tpu.memory_space<vmem>>, vector<8x1xf32>
    %c96 = arith.constant 96 : index
    %c0_19 = arith.constant 0 : index
    %42 = vector.load %arg3[%c96, %c0_19] : memref<208x128xf32, #tpu.memory_space<vmem>>, vector<4x12xf32>
    %c104 = arith.constant 104 : index
    %c0_20 = arith.constant 0 : index
    %43 = vector.load %arg3[%c104, %c0_20] : memref<208x128xf32, #tpu.memory_space<vmem>>, vector<4x1xf32>
    %c112 = arith.constant 112 : index
    %c0_21 = arith.constant 0 : index
    %44 = vector.load %arg3[%c112, %c0_21] : memref<208x128xf32, #tpu.memory_space<vmem>>, vector<4x1xf32>
    %c120 = arith.constant 120 : index
    %c0_22 = arith.constant 0 : index
    %45 = vector.load %arg3[%c120, %c0_22] : memref<208x128xf32, #tpu.memory_space<vmem>>, vector<4x1xf32>
    %c128 = arith.constant 128 : index
    %c0_23 = arith.constant 0 : index
    %46 = vector.load %arg3[%c128, %c0_23] : memref<208x128xf32, #tpu.memory_space<vmem>>, vector<8x6xf32>
    %c136 = arith.constant 136 : index
    %c0_24 = arith.constant 0 : index
    %47 = vector.load %arg3[%c136, %c0_24] : memref<208x128xf32, #tpu.memory_space<vmem>>, vector<8x1xf32>
    %c144 = arith.constant 144 : index
    %c0_25 = arith.constant 0 : index
    %48 = vector.load %arg3[%c144, %c0_25] : memref<208x128xf32, #tpu.memory_space<vmem>>, vector<4x12xf32>
    %c152 = arith.constant 152 : index
    %c0_26 = arith.constant 0 : index
    %49 = vector.load %arg3[%c152, %c0_26] : memref<208x128xf32, #tpu.memory_space<vmem>>, vector<4x1xf32>
    %c160 = arith.constant 160 : index
    %c0_27 = arith.constant 0 : index
    %50 = vector.load %arg3[%c160, %c0_27] : memref<208x128xf32, #tpu.memory_space<vmem>>, vector<4x1xf32>
    %c168 = arith.constant 168 : index
    %c0_28 = arith.constant 0 : index
    %51 = vector.load %arg3[%c168, %c0_28] : memref<208x128xf32, #tpu.memory_space<vmem>>, vector<4x1xf32>
    %c176 = arith.constant 176 : index
    %c0_29 = arith.constant 0 : index
    %52 = vector.load %arg3[%c176, %c0_29] : memref<208x128xf32, #tpu.memory_space<vmem>>, vector<16x4xf32>
    %c192 = arith.constant 192 : index
    %c0_30 = arith.constant 0 : index
    %53 = vector.load %arg3[%c192, %c0_30] : memref<208x128xf32, #tpu.memory_space<vmem>>, vector<16x1xf32>
    %c0_31 = arith.constant 0 : index
    %c0_32 = arith.constant 0 : index
    %54 = vector.load %arg0[%c0_31, %c0_32] : memref<16x128xf32, #tpu.memory_space<vmem>>, vector<16x128xf32>
    %c1_i32 = arith.constant 1 : i32
    %55 = tpu.dynamic_rotate %54 by %c1_i32 dim 1 : vector<16x128xf32>, i32 -> vector<16x128xf32>
    %56 = vector.extract_strided_slice %30 {offsets = [0, 0], sizes = [4, 16], strides = [1, 1]} : vector<4x48xf32> to vector<4x16xf32>
    %cst_33 = arith.constant dense<0.000000e+00> : vector<4x128xf32>
    %57 = tpu.matmul %56, %55, %cst_33 {dimension_numbers = #tpu.dot_dimension_numbers<[1], [0], [0], [1], [0, 0, 1, 1], [], []>} : vector<4x16xf32>, vector<16x128xf32>, vector<4x128xf32> -> vector<4x128xf32>
    %58 = vector.extract_strided_slice %30 {offsets = [0, 16], sizes = [4, 16], strides = [1, 1]} : vector<4x48xf32> to vector<4x16xf32>
    %cst_34 = arith.constant dense<0.000000e+00> : vector<4x128xf32>
    %59 = tpu.matmul %58, %54, %cst_34 {dimension_numbers = #tpu.dot_dimension_numbers<[1], [0], [0], [1], [0, 0, 1, 1], [], []>} : vector<4x16xf32>, vector<16x128xf32>, vector<4x128xf32> -> vector<4x128xf32>
    %60 = arith.addf %57, %59 : vector<4x128xf32>
    %c127_i32 = arith.constant 127 : i32
    %61 = tpu.dynamic_rotate %54 by %c127_i32 dim 1 : vector<16x128xf32>, i32 -> vector<16x128xf32>
    %62 = vector.extract_strided_slice %30 {offsets = [0, 32], sizes = [4, 16], strides = [1, 1]} : vector<4x48xf32> to vector<4x16xf32>
    %cst_35 = arith.constant dense<0.000000e+00> : vector<4x128xf32>
    %63 = tpu.matmul %62, %61, %cst_35 {dimension_numbers = #tpu.dot_dimension_numbers<[1], [0], [0], [1], [0, 0, 1, 1], [], []>} : vector<4x16xf32>, vector<16x128xf32>, vector<4x128xf32> -> vector<4x128xf32>
    %64 = arith.addf %60, %63 : vector<4x128xf32>
    %65 = vector.broadcast %31 : vector<4x1xf32> to vector<4x128xf32>
    %66 = arith.addf %64, %65 : vector<4x128xf32>
    %cst_36 = arith.constant 0.000000e+00 : f32
    %67 = vector.broadcast %cst_36 : f32 to vector<4x128xf32>
    %68 = arith.maximumf %66, %67 : vector<4x128xf32>
    %69 = vector.broadcast %27 : vector<1x128xf32> to vector<4x128xf32>
    %70 = arith.mulf %68, %69 : vector<4x128xf32>
    %c1_i32_37 = arith.constant 1 : i32
    %71 = tpu.dynamic_rotate %70 by %c1_i32_37 dim 1 : vector<4x128xf32>, i32 -> vector<4x128xf32>
    %72 = vector.extract_strided_slice %32 {offsets = [0, 0], sizes = [4, 4], strides = [1, 1]} : vector<4x12xf32> to vector<4x4xf32>
    %cst_38 = arith.constant dense<0.000000e+00> : vector<4x128xf32>
    %73 = tpu.matmul %72, %71, %cst_38 {dimension_numbers = #tpu.dot_dimension_numbers<[1], [0], [0], [1], [0, 0, 1, 1], [], []>} : vector<4x4xf32>, vector<4x128xf32>, vector<4x128xf32> -> vector<4x128xf32>
    %74 = vector.extract_strided_slice %32 {offsets = [0, 4], sizes = [4, 4], strides = [1, 1]} : vector<4x12xf32> to vector<4x4xf32>
    %cst_39 = arith.constant dense<0.000000e+00> : vector<4x128xf32>
    %75 = tpu.matmul %74, %70, %cst_39 {dimension_numbers = #tpu.dot_dimension_numbers<[1], [0], [0], [1], [0, 0, 1, 1], [], []>} : vector<4x4xf32>, vector<4x128xf32>, vector<4x128xf32> -> vector<4x128xf32>
    %76 = arith.addf %73, %75 : vector<4x128xf32>
    %c127_i32_40 = arith.constant 127 : i32
    %77 = tpu.dynamic_rotate %70 by %c127_i32_40 dim 1 : vector<4x128xf32>, i32 -> vector<4x128xf32>
    %78 = vector.extract_strided_slice %32 {offsets = [0, 8], sizes = [4, 4], strides = [1, 1]} : vector<4x12xf32> to vector<4x4xf32>
    %cst_41 = arith.constant dense<0.000000e+00> : vector<4x128xf32>
    %79 = tpu.matmul %78, %77, %cst_41 {dimension_numbers = #tpu.dot_dimension_numbers<[1], [0], [0], [1], [0, 0, 1, 1], [], []>} : vector<4x4xf32>, vector<4x128xf32>, vector<4x128xf32> -> vector<4x128xf32>
    %80 = arith.addf %76, %79 : vector<4x128xf32>
    %81 = vector.broadcast %33 : vector<4x1xf32> to vector<4x128xf32>
    %82 = arith.addf %80, %81 : vector<4x128xf32>
    %83 = arith.mulf %82, %82 : vector<4x128xf32>
    %84 = tpu.concatenate %82, %83 in 0 : vector<4x128xf32>, vector<4x128xf32> -> vector<8x128xf32>
    %cst_42 = arith.constant dense<0.000000e+00> : vector<8x2xf32>
    %85 = tpu.matmul %84, %25, %cst_42 {dimension_numbers = #tpu.dot_dimension_numbers<[1], [0], [0], [1], [0, 0, 1, 1], [], []>} : vector<8x128xf32>, vector<128x2xf32>, vector<8x2xf32> -> vector<8x2xf32>
    %cst_43 = arith.constant 6.250000e-02 : f32
    %86 = vector.broadcast %cst_43 : f32 to vector<8x2xf32>
    %87 = arith.mulf %85, %86 : vector<8x2xf32>
    %88 = vector.extract_strided_slice %87 {offsets = [0, 0], sizes = [4, 2], strides = [1, 1]} : vector<8x2xf32> to vector<4x2xf32>
    %89 = vector.extract_strided_slice %87 {offsets = [4, 0], sizes = [4, 2], strides = [1, 1]} : vector<8x2xf32> to vector<4x2xf32>
    %90 = arith.mulf %88, %88 : vector<4x2xf32>
    %91 = arith.subf %89, %90 : vector<4x2xf32>
    %cst_44 = arith.constant 0.000000e+00 : f32
    %92 = vector.broadcast %cst_44 : f32 to vector<4x2xf32>
    %93 = arith.maximumf %91, %92 : vector<4x2xf32>
    %cst_45 = arith.constant 9.99999974E-6 : f32
    %94 = vector.broadcast %cst_45 : f32 to vector<4x2xf32>
    %95 = arith.addf %93, %94 : vector<4x2xf32>
    %96 = math.rsqrt %95 : vector<4x2xf32>
    %97 = tpu.concatenate %88, %96 in 0 : vector<4x2xf32>, vector<4x2xf32> -> vector<8x2xf32>
    %cst_46 = arith.constant dense<0.000000e+00> : vector<8x128xf32>
    %98 = tpu.matmul %97, %12, %cst_46 {dimension_numbers = #tpu.dot_dimension_numbers<[1], [0], [0], [1], [0, 0, 1, 1], [], []>} : vector<8x2xf32>, vector<2x128xf32>, vector<8x128xf32> -> vector<8x128xf32>
    %99 = vector.extract_strided_slice %98 {offsets = [0, 0], sizes = [4, 128], strides = [1, 1]} : vector<8x128xf32> to vector<4x128xf32>
    %100 = arith.subf %82, %99 : vector<4x128xf32>
    %101 = vector.extract_strided_slice %98 {offsets = [4, 0], sizes = [4, 128], strides = [1, 1]} : vector<8x128xf32> to vector<4x128xf32>
    %102 = arith.mulf %100, %101 : vector<4x128xf32>
    %cst_47 = arith.constant 0.000000e+00 : f32
    %103 = vector.broadcast %cst_47 : f32 to vector<4x128xf32>
    %104 = arith.maximumf %102, %103 : vector<4x128xf32>
    %105 = arith.addf %70, %104 : vector<4x128xf32>
    %c2_i32_48 = arith.constant 2 : i32
    %106 = tpu.dynamic_rotate %105 by %c2_i32_48 dim 1 : vector<4x128xf32>, i32 -> vector<4x128xf32>
    %107 = vector.extract_strided_slice %34 {offsets = [0, 0], sizes = [4, 4], strides = [1, 1]} : vector<4x12xf32> to vector<4x4xf32>
    %cst_49 = arith.constant dense<0.000000e+00> : vector<4x128xf32>
    %108 = tpu.matmul %107, %106, %cst_49 {dimension_numbers = #tpu.dot_dimension_numbers<[1], [0], [0], [1], [0, 0, 1, 1], [], []>} : vector<4x4xf32>, vector<4x128xf32>, vector<4x128xf32> -> vector<4x128xf32>
    %109 = vector.extract_strided_slice %34 {offsets = [0, 4], sizes = [4, 4], strides = [1, 1]} : vector<4x12xf32> to vector<4x4xf32>
    %cst_50 = arith.constant dense<0.000000e+00> : vector<4x128xf32>
    %110 = tpu.matmul %109, %105, %cst_50 {dimension_numbers = #tpu.dot_dimension_numbers<[1], [0], [0], [1], [0, 0, 1, 1], [], []>} : vector<4x4xf32>, vector<4x128xf32>, vector<4x128xf32> -> vector<4x128xf32>
    %111 = arith.addf %108, %110 : vector<4x128xf32>
    %c126_i32 = arith.constant 126 : i32
    %112 = tpu.dynamic_rotate %105 by %c126_i32 dim 1 : vector<4x128xf32>, i32 -> vector<4x128xf32>
    %113 = vector.extract_strided_slice %34 {offsets = [0, 8], sizes = [4, 4], strides = [1, 1]} : vector<4x12xf32> to vector<4x4xf32>
    %cst_51 = arith.constant dense<0.000000e+00> : vector<4x128xf32>
    %114 = tpu.matmul %113, %112, %cst_51 {dimension_numbers = #tpu.dot_dimension_numbers<[1], [0], [0], [1], [0, 0, 1, 1], [], []>} : vector<4x4xf32>, vector<4x128xf32>, vector<4x128xf32> -> vector<4x128xf32>
    %115 = arith.addf %111, %114 : vector<4x128xf32>
    %116 = vector.broadcast %35 : vector<4x1xf32> to vector<4x128xf32>
    %117 = arith.addf %115, %116 : vector<4x128xf32>
    %118 = arith.mulf %117, %117 : vector<4x128xf32>
    %119 = tpu.concatenate %117, %118 in 0 : vector<4x128xf32>, vector<4x128xf32> -> vector<8x128xf32>
    %cst_52 = arith.constant dense<0.000000e+00> : vector<8x2xf32>
    %120 = tpu.matmul %119, %25, %cst_52 {dimension_numbers = #tpu.dot_dimension_numbers<[1], [0], [0], [1], [0, 0, 1, 1], [], []>} : vector<8x128xf32>, vector<128x2xf32>, vector<8x2xf32> -> vector<8x2xf32>
    %cst_53 = arith.constant 6.250000e-02 : f32
    %121 = vector.broadcast %cst_53 : f32 to vector<8x2xf32>
    %122 = arith.mulf %120, %121 : vector<8x2xf32>
    %123 = vector.extract_strided_slice %122 {offsets = [0, 0], sizes = [4, 2], strides = [1, 1]} : vector<8x2xf32> to vector<4x2xf32>
    %124 = vector.extract_strided_slice %122 {offsets = [4, 0], sizes = [4, 2], strides = [1, 1]} : vector<8x2xf32> to vector<4x2xf32>
    %125 = arith.mulf %123, %123 : vector<4x2xf32>
    %126 = arith.subf %124, %125 : vector<4x2xf32>
    %cst_54 = arith.constant 0.000000e+00 : f32
    %127 = vector.broadcast %cst_54 : f32 to vector<4x2xf32>
    %128 = arith.maximumf %126, %127 : vector<4x2xf32>
    %cst_55 = arith.constant 9.99999974E-6 : f32
    %129 = vector.broadcast %cst_55 : f32 to vector<4x2xf32>
    %130 = arith.addf %128, %129 : vector<4x2xf32>
    %131 = math.rsqrt %130 : vector<4x2xf32>
    %132 = tpu.concatenate %123, %131 in 0 : vector<4x2xf32>, vector<4x2xf32> -> vector<8x2xf32>
    %cst_56 = arith.constant dense<0.000000e+00> : vector<8x128xf32>
    %133 = tpu.matmul %132, %12, %cst_56 {dimension_numbers = #tpu.dot_dimension_numbers<[1], [0], [0], [1], [0, 0, 1, 1], [], []>} : vector<8x2xf32>, vector<2x128xf32>, vector<8x128xf32> -> vector<8x128xf32>
    %134 = vector.extract_strided_slice %133 {offsets = [0, 0], sizes = [4, 128], strides = [1, 1]} : vector<8x128xf32> to vector<4x128xf32>
    %135 = arith.subf %117, %134 : vector<4x128xf32>
    %136 = vector.extract_strided_slice %133 {offsets = [4, 0], sizes = [4, 128], strides = [1, 1]} : vector<8x128xf32> to vector<4x128xf32>
    %137 = arith.mulf %135, %136 : vector<4x128xf32>
    %cst_57 = arith.constant 0.000000e+00 : f32
    %138 = vector.broadcast %cst_57 : f32 to vector<4x128xf32>
    %139 = arith.maximumf %137, %138 : vector<4x128xf32>
    %140 = arith.addf %105, %139 : vector<4x128xf32>
    %cst_58 = arith.constant dense<0.000000e+00> : vector<8x128xf32>
    %141 = tpu.matmul %36, %140, %cst_58 {dimension_numbers = #tpu.dot_dimension_numbers<[1], [0], [0], [1], [0, 0, 1, 1], [], []>} : vector<8x4xf32>, vector<4x128xf32>, vector<8x128xf32> -> vector<8x128xf32>
    %142 = vector.broadcast %37 : vector<8x1xf32> to vector<8x128xf32>
    %143 = arith.addf %141, %142 : vector<8x128xf32>
    %144 = vector.broadcast %28 : vector<1x128xf32> to vector<8x128xf32>
    %145 = arith.mulf %143, %144 : vector<8x128xf32>
    %c0_59 = arith.constant 0 : index
    %c0_60 = arith.constant 0 : index
    %146 = vector.load %arg4[%c0_59, %c0_60] : memref<8x128xf32, #tpu.memory_space<vmem>>, vector<8x128xf32>
    tpu.vector_store %arg4[%c0_59, %c0_60], %145 {strides = array<i32>} : memref<8x128xf32, #tpu.memory_space<vmem>>, vector<8x128xf32>,
    %cst_61 = arith.constant dense<0.000000e+00> : vector<4x128xf32>
    %147 = tpu.matmul %38, %143, %cst_61 {dimension_numbers = #tpu.dot_dimension_numbers<[1], [0], [0], [1], [0, 0, 1, 1], [], []>} : vector<4x8xf32>, vector<8x128xf32>, vector<4x128xf32> -> vector<4x128xf32>
    %148 = vector.broadcast %39 : vector<4x1xf32> to vector<4x128xf32>
    %149 = arith.addf %147, %148 : vector<4x128xf32>
    %cst_62 = arith.constant 0.000000e+00 : f32
    %150 = vector.broadcast %cst_62 : f32 to vector<4x128xf32>
    %151 = arith.maximumf %149, %150 : vector<4x128xf32>
    %152 = vector.broadcast %27 : vector<1x128xf32> to vector<4x128xf32>
    %153 = arith.mulf %151, %152 : vector<4x128xf32>
    %cst_63 = arith.constant dense<0.000000e+00> : vector<8x2xf32>
    %154 = tpu.matmul %40, %29, %cst_63 {dimension_numbers = #tpu.dot_dimension_numbers<[1], [0], [0], [1], [0, 0, 1, 1], [], []>} : vector<8x6xf32>, vector<6x2xf32>, vector<8x2xf32> -> vector<8x2xf32>
    %155 = vector.broadcast %41 : vector<8x1xf32> to vector<8x2xf32>
    %156 = arith.addf %154, %155 : vector<8x2xf32>
    %cst_64 = arith.constant 0.000000e+00 : f32
    %157 = vector.broadcast %cst_64 : f32 to vector<8x2xf32>
    %158 = arith.maximumf %156, %157 : vector<8x2xf32>
    %cst_65 = arith.constant dense<0.000000e+00> : vector<8x128xf32>
    %159 = tpu.matmul %158, %12, %cst_65 {dimension_numbers = #tpu.dot_dimension_numbers<[1], [0], [0], [1], [0, 0, 1, 1], [], []>} : vector<8x2xf32>, vector<2x128xf32>, vector<8x128xf32> -> vector<8x128xf32>
    %160 = vector.extract_strided_slice %159 {offsets = [4, 0], sizes = [4, 128], strides = [1, 1]} : vector<8x128xf32> to vector<4x128xf32>
    %161 = arith.mulf %160, %153 : vector<4x128xf32>
    %162 = vector.extract_strided_slice %159 {offsets = [0, 0], sizes = [4, 128], strides = [1, 1]} : vector<8x128xf32> to vector<4x128xf32>
    %163 = arith.addf %161, %162 : vector<4x128xf32>
    %c2_i32_66 = arith.constant 2 : i32
    %164 = tpu.dynamic_rotate %163 by %c2_i32_66 dim 1 : vector<4x128xf32>, i32 -> vector<4x128xf32>
    %165 = vector.extract_strided_slice %42 {offsets = [0, 0], sizes = [4, 4], strides = [1, 1]} : vector<4x12xf32> to vector<4x4xf32>
    %cst_67 = arith.constant dense<0.000000e+00> : vector<4x128xf32>
    %166 = tpu.matmul %165, %164, %cst_67 {dimension_numbers = #tpu.dot_dimension_numbers<[1], [0], [0], [1], [0, 0, 1, 1], [], []>} : vector<4x4xf32>, vector<4x128xf32>, vector<4x128xf32> -> vector<4x128xf32>
    %167 = vector.extract_strided_slice %42 {offsets = [0, 4], sizes = [4, 4], strides = [1, 1]} : vector<4x12xf32> to vector<4x4xf32>
    %cst_68 = arith.constant dense<0.000000e+00> : vector<4x128xf32>
    %168 = tpu.matmul %167, %163, %cst_68 {dimension_numbers = #tpu.dot_dimension_numbers<[1], [0], [0], [1], [0, 0, 1, 1], [], []>} : vector<4x4xf32>, vector<4x128xf32>, vector<4x128xf32> -> vector<4x128xf32>
    %169 = arith.addf %166, %168 : vector<4x128xf32>
    %c126_i32_69 = arith.constant 126 : i32
    %170 = tpu.dynamic_rotate %163 by %c126_i32_69 dim 1 : vector<4x128xf32>, i32 -> vector<4x128xf32>
    %171 = vector.extract_strided_slice %42 {offsets = [0, 8], sizes = [4, 4], strides = [1, 1]} : vector<4x12xf32> to vector<4x4xf32>
    %cst_70 = arith.constant dense<0.000000e+00> : vector<4x128xf32>
    %172 = tpu.matmul %171, %170, %cst_70 {dimension_numbers = #tpu.dot_dimension_numbers<[1], [0], [0], [1], [0, 0, 1, 1], [], []>} : vector<4x4xf32>, vector<4x128xf32>, vector<4x128xf32> -> vector<4x128xf32>
    %173 = arith.addf %169, %172 : vector<4x128xf32>
    %174 = vector.broadcast %43 : vector<4x1xf32> to vector<4x128xf32>
    %175 = arith.addf %173, %174 : vector<4x128xf32>
    %176 = vector.broadcast %27 : vector<1x128xf32> to vector<4x128xf32>
    %177 = arith.mulf %175, %176 : vector<4x128xf32>
    %178 = arith.mulf %177, %177 : vector<4x128xf32>
    %179 = tpu.concatenate %177, %178 in 0 : vector<4x128xf32>, vector<4x128xf32> -> vector<8x128xf32>
    %cst_71 = arith.constant dense<0.000000e+00> : vector<8xf32>
    %180 = vector.multi_reduction <add>, %179, %cst_71 [1] : vector<8x128xf32> to vector<8xf32>
    %181 = vector.shape_cast %180 : vector<8xf32> to vector<8x1xf32>
    %cst_72 = arith.constant 3.125000e-02 : f32
    %182 = vector.broadcast %cst_72 : f32 to vector<8x1xf32>
    %183 = arith.mulf %181, %182 : vector<8x1xf32>
    %184 = vector.extract_strided_slice %183 {offsets = [0, 0], sizes = [4, 1], strides = [1, 1]} : vector<8x1xf32> to vector<4x1xf32>
    %185 = vector.extract_strided_slice %183 {offsets = [4, 0], sizes = [4, 1], strides = [1, 1]} : vector<8x1xf32> to vector<4x1xf32>
    %186 = arith.mulf %184, %184 : vector<4x1xf32>
    %187 = arith.subf %185, %186 : vector<4x1xf32>
    %cst_73 = arith.constant 0.000000e+00 : f32
    %188 = vector.broadcast %cst_73 : f32 to vector<4x1xf32>
    %189 = arith.maximumf %187, %188 : vector<4x1xf32>
    %cst_74 = arith.constant 9.99999974E-6 : f32
    %190 = vector.broadcast %cst_74 : f32 to vector<4x1xf32>
    %191 = arith.addf %189, %190 : vector<4x1xf32>
    %192 = math.rsqrt %191 : vector<4x1xf32>
    %193 = arith.mulf %192, %44 : vector<4x1xf32>
    %194 = vector.broadcast %184 : vector<4x1xf32> to vector<4x128xf32>
    %195 = arith.subf %175, %194 : vector<4x128xf32>
    %196 = vector.broadcast %193 : vector<4x1xf32> to vector<4x128xf32>
    %197 = arith.mulf %195, %196 : vector<4x128xf32>
    %198 = vector.broadcast %45 : vector<4x1xf32> to vector<4x128xf32>
    %199 = arith.addf %197, %198 : vector<4x128xf32>
    %cst_75 = arith.constant 0.000000e+00 : f32
    %200 = vector.broadcast %cst_75 : f32 to vector<4x128xf32>
    %201 = arith.maximumf %199, %200 : vector<4x128xf32>
    %202 = arith.addf %163, %201 : vector<4x128xf32>
    %203 = vector.broadcast %27 : vector<1x128xf32> to vector<4x128xf32>
    %204 = arith.mulf %202, %203 : vector<4x128xf32>
    %cst_76 = arith.constant dense<0.000000e+00> : vector<8x2xf32>
    %205 = tpu.matmul %46, %29, %cst_76 {dimension_numbers = #tpu.dot_dimension_numbers<[1], [0], [0], [1], [0, 0, 1, 1], [], []>} : vector<8x6xf32>, vector<6x2xf32>, vector<8x2xf32> -> vector<8x2xf32>
    %206 = vector.broadcast %47 : vector<8x1xf32> to vector<8x2xf32>
    %207 = arith.addf %205, %206 : vector<8x2xf32>
    %cst_77 = arith.constant 0.000000e+00 : f32
    %208 = vector.broadcast %cst_77 : f32 to vector<8x2xf32>
    %209 = arith.maximumf %207, %208 : vector<8x2xf32>
    %cst_78 = arith.constant dense<0.000000e+00> : vector<8x128xf32>
    %210 = tpu.matmul %209, %12, %cst_78 {dimension_numbers = #tpu.dot_dimension_numbers<[1], [0], [0], [1], [0, 0, 1, 1], [], []>} : vector<8x2xf32>, vector<2x128xf32>, vector<8x128xf32> -> vector<8x128xf32>
    %211 = vector.extract_strided_slice %210 {offsets = [4, 0], sizes = [4, 128], strides = [1, 1]} : vector<8x128xf32> to vector<4x128xf32>
    %212 = arith.mulf %211, %204 : vector<4x128xf32>
    %213 = vector.extract_strided_slice %210 {offsets = [0, 0], sizes = [4, 128], strides = [1, 1]} : vector<8x128xf32> to vector<4x128xf32>
    %214 = arith.addf %212, %213 : vector<4x128xf32>
    %c1_i32_79 = arith.constant 1 : i32
    %215 = tpu.dynamic_rotate %214 by %c1_i32_79 dim 1 : vector<4x128xf32>, i32 -> vector<4x128xf32>
    %216 = vector.extract_strided_slice %48 {offsets = [0, 0], sizes = [4, 4], strides = [1, 1]} : vector<4x12xf32> to vector<4x4xf32>
    %cst_80 = arith.constant dense<0.000000e+00> : vector<4x128xf32>
    %217 = tpu.matmul %216, %215, %cst_80 {dimension_numbers = #tpu.dot_dimension_numbers<[1], [0], [0], [1], [0, 0, 1, 1], [], []>} : vector<4x4xf32>, vector<4x128xf32>, vector<4x128xf32> -> vector<4x128xf32>
    %218 = vector.extract_strided_slice %48 {offsets = [0, 4], sizes = [4, 4], strides = [1, 1]} : vector<4x12xf32> to vector<4x4xf32>
    %cst_81 = arith.constant dense<0.000000e+00> : vector<4x128xf32>
    %219 = tpu.matmul %218, %214, %cst_81 {dimension_numbers = #tpu.dot_dimension_numbers<[1], [0], [0], [1], [0, 0, 1, 1], [], []>} : vector<4x4xf32>, vector<4x128xf32>, vector<4x128xf32> -> vector<4x128xf32>
    %220 = arith.addf %217, %219 : vector<4x128xf32>
    %c127_i32_82 = arith.constant 127 : i32
    %221 = tpu.dynamic_rotate %214 by %c127_i32_82 dim 1 : vector<4x128xf32>, i32 -> vector<4x128xf32>
    %222 = vector.extract_strided_slice %48 {offsets = [0, 8], sizes = [4, 4], strides = [1, 1]} : vector<4x12xf32> to vector<4x4xf32>
    %cst_83 = arith.constant dense<0.000000e+00> : vector<4x128xf32>
    %223 = tpu.matmul %222, %221, %cst_83 {dimension_numbers = #tpu.dot_dimension_numbers<[1], [0], [0], [1], [0, 0, 1, 1], [], []>} : vector<4x4xf32>, vector<4x128xf32>, vector<4x128xf32> -> vector<4x128xf32>
    %224 = arith.addf %220, %223 : vector<4x128xf32>
    %225 = vector.broadcast %49 : vector<4x1xf32> to vector<4x128xf32>
    %226 = arith.addf %224, %225 : vector<4x128xf32>
    %227 = vector.broadcast %27 : vector<1x128xf32> to vector<4x128xf32>
    %228 = arith.mulf %226, %227 : vector<4x128xf32>
    %229 = arith.mulf %228, %228 : vector<4x128xf32>
    %230 = tpu.concatenate %228, %229 in 0 : vector<4x128xf32>, vector<4x128xf32> -> vector<8x128xf32>
    %cst_84 = arith.constant dense<0.000000e+00> : vector<8xf32>
    %231 = vector.multi_reduction <add>, %230, %cst_84 [1] : vector<8x128xf32> to vector<8xf32>
    %232 = vector.shape_cast %231 : vector<8xf32> to vector<8x1xf32>
    %cst_85 = arith.constant 3.125000e-02 : f32
    %233 = vector.broadcast %cst_85 : f32 to vector<8x1xf32>
    %234 = arith.mulf %232, %233 : vector<8x1xf32>
    %235 = vector.extract_strided_slice %234 {offsets = [0, 0], sizes = [4, 1], strides = [1, 1]} : vector<8x1xf32> to vector<4x1xf32>
    %236 = vector.extract_strided_slice %234 {offsets = [4, 0], sizes = [4, 1], strides = [1, 1]} : vector<8x1xf32> to vector<4x1xf32>
    %237 = arith.mulf %235, %235 : vector<4x1xf32>
    %238 = arith.subf %236, %237 : vector<4x1xf32>
    %cst_86 = arith.constant 0.000000e+00 : f32
    %239 = vector.broadcast %cst_86 : f32 to vector<4x1xf32>
    %240 = arith.maximumf %238, %239 : vector<4x1xf32>
    %cst_87 = arith.constant 9.99999974E-6 : f32
    %241 = vector.broadcast %cst_87 : f32 to vector<4x1xf32>
    %242 = arith.addf %240, %241 : vector<4x1xf32>
    %243 = math.rsqrt %242 : vector<4x1xf32>
    %244 = arith.mulf %243, %50 : vector<4x1xf32>
    %245 = vector.broadcast %235 : vector<4x1xf32> to vector<4x128xf32>
    %246 = arith.subf %226, %245 : vector<4x128xf32>
    %247 = vector.broadcast %244 : vector<4x1xf32> to vector<4x128xf32>
    %248 = arith.mulf %246, %247 : vector<4x128xf32>
    %249 = vector.broadcast %51 : vector<4x1xf32> to vector<4x128xf32>
    %250 = arith.addf %248, %249 : vector<4x128xf32>
    %cst_88 = arith.constant 0.000000e+00 : f32
    %251 = vector.broadcast %cst_88 : f32 to vector<4x128xf32>
    %252 = arith.maximumf %250, %251 : vector<4x128xf32>
    %253 = arith.addf %214, %252 : vector<4x128xf32>
    %254 = vector.broadcast %27 : vector<1x128xf32> to vector<4x128xf32>
    %255 = arith.mulf %253, %254 : vector<4x128xf32>
    %cst_89 = arith.constant dense<0.000000e+00> : vector<16x128xf32>
    %256 = tpu.matmul %52, %255, %cst_89 {dimension_numbers = #tpu.dot_dimension_numbers<[1], [0], [0], [1], [0, 0, 1, 1], [], []>} : vector<16x4xf32>, vector<4x128xf32>, vector<16x128xf32> -> vector<16x128xf32>
    %257 = vector.broadcast %53 : vector<16x1xf32> to vector<16x128xf32>
    %258 = arith.addf %256, %257 : vector<16x128xf32>
    %259 = vector.broadcast %28 : vector<1x128xf32> to vector<16x128xf32>
    %260 = arith.mulf %258, %259 : vector<16x128xf32>
    %c0_90 = arith.constant 0 : index
    %c0_91 = arith.constant 0 : index
    %261 = vector.load %arg5[%c0_90, %c0_91] : memref<16x128xf32, #tpu.memory_space<vmem>>, vector<16x128xf32>
    tpu.vector_store %arg5[%c0_90, %c0_91], %260 {strides = array<i32>} : memref<16x128xf32, #tpu.memory_space<vmem>>, vector<16x128xf32>,
    return
  }
}

</mosaic_0001>

<bundles_post_ra>
// kernel: tpu_custom_call.1
= control target key start
LH: loop header
LB: loop body
LE: loop exit
PB: predicated region body
PF: predicated region fallthrough
CT: control target
= control target key end

     0   :  { %11 = vsyncpa [#allocation3], 0  ;;  %s3458_s0 = inlined_call_operand.hbm [shape: f32[16,128], index: 0, kind: input, shape index: {}]   ;;  %s3459_s1 = inlined_call_operand.vmem [shape: f32[6,2], index: 1, kind: input, shape index: {}]   ;;  %s3460_s2 = inlined_call_operand.vmem [shape: f32[1,128], index: 2, kind: input, shape index: {}]   ;;  %s3461_s3 = inlined_call_operand.hbm [shape: f32[208,128], index: 3, kind: input, shape index: {}]   ;;  %s3462_s4 = inlined_call_operand.hbm [shape: f32[8,128], index: 4, kind: output, shape index: {0}]   ;;  %s3463_s5 = inlined_call_operand.hbm [shape: f32[16,128], index: 5, kind: output, shape index: {1}]  }
   0x1   :  { %12 = vsyncpa [#allocation6], 0 }
   0x2   :  { %13 = vsyncpa [#allocation4], 0 }
   0x3   :  { %14 = vsyncpa [#allocation9], 0  ;;  %s2938_s18 = smov [#allocation2]  }
   0x4   :  { %s20_s19 = sshll.u32 %s2938_s18, 4  ;;  %s21_s19 = int_to_ptr.vmem [resolvable:$true] %s20_s19 }
   0x5   :  { %s2858_s20 = scalar_lea.vmem %s21_s19, 256  ;;  %p2863_p1 = scmp.lt.s32.totalorder %s21_s19, %s21_s19 }
   0x6   :  { %p2859_p0 = scmp.ne.s32.totalorder %s21_s19, %s2858_s20  ;;  %p2864_p2 = scmp.lt.s32.totalorder %s2858_s20, %s2858_s20 }
   0x8   :  { %p2865_p3 = por %p2864_p2, %p2863_p1 }
   0xa   :  { %p2866_p4 = pnand %p2865_p3, %p2859_p0 }
   0xc   :  { %2869 = shalt.err (!%p2866_p4)
}
   0xd   :  { %s2939_s21 = smov 128   ;;  %s2940_s22 = smov 8  }
   0xe   :  { %26 = dma.hbm_to_vmem [thread:$0]  %s3458_s0, 256, %s21_s19, [#allocation3], %s2939_s21, %s2939_s21, %s2940_s22  }
   0xf   :  { %s2941_s25 = smov [#allocation5]  }
  0x10   :  { %s36_s26 = sshll.u32 %s2941_s25, 4  ;;  %s37_s26 = int_to_ptr.vmem [resolvable:$true] %s36_s26 }
  0x11   :  { %s2878_s27 = scalar_lea.vmem %s37_s26, 3328  ;;  %p2883_p6 = scmp.lt.s32.totalorder %s37_s26, %s37_s26 }
  0x12   :  { %p2879_p5 = scmp.ne.s32.totalorder %s37_s26, %s2878_s27  ;;  %p2884_p7 = scmp.lt.s32.totalorder %s2878_s27, %s2878_s27 }
  0x14   :  { %p2885_p8 = por %p2884_p7, %p2883_p6 }
  0x16   :  { %p2886_p9 = pnand %p2885_p8, %p2879_p5 }
  0x18   :  { %2889 = shalt.err (!%p2886_p9)
}
  0x19   :  { %42 = dma.hbm_to_vmem [thread:$0]  %s3461_s3, 3328, %s37_s26, [#allocation6], %s2939_s21, %s2939_s21, %s2940_s22  }
  0x1a   :  { %2930 = dma.done.wait [#allocation3], 256  }
  0x1b   :  { %2931 = vsyncadd [#allocation3], 4294967040 }
  0x1c   :  { %2932 = dma.done.wait [#allocation6], 3328  }
  0x1d   :  { %2933 = vsyncadd [#allocation6], 4294963968  ;;  %v2942_v0 = vmov 0.0   ;;  %vm3465_vm0 = vmmov 0   ;;  %v2944_v1 = vmov 0   ;;  %v196_v2 = vld [vmem:[#allocation2 + $0x8] sm:$0xff]  ;;  %v49_v13 = vlaneseq }
  0x1e   :  { %2633 = vmatprep.subr.mxu1 %v2942_v0  ;;  %2626 = vmatprep.subr.mxu0 %v2942_v0  ;;  %v195_v3 = vld [vmem:[#allocation2] sm:$0xff]  ;;  %s2945_s0 = smov 1   ;;  %v169_v4 = vld [vmem:[#allocation5] sm:$0xf]  ;;  %s2946_s3 = smov 112   ;;  %vm204_vm1 = vcmask 130048  }
  0x1f   :  { %2630 = vmatprep.mubr.msk.f32.mxu0 %vm3465_vm0, %v2942_v0  ;;  %2637 = vmatprep.mubr.msk.f32.mxu1 %vm3465_vm0, %v2942_v0  ;;  %s2947_s30 = smov 127   ;;  %s2948_s6 = smov 96   ;;  %v170_v5 = vld [vmem:[#allocation5 + $0x8] sm:$0xf]  ;;  %v3020_v12 = vld [vmem:[#allocation5 + $0x10] sm:$0xf] }
  0x20   :  { %2840 = vset.pattern.permute.xlu0 %v2944_v1  ;;  %2841 = vset.pattern.permute.xlu1 %v2944_v1  ;;  %s2949_s7 = smov 124   ;;  %v3024_v14 = vshrl.u32 %v49_v13, 7  ;;  %v50_v17 = vand.u32 127, %v49_v13  ;;  %vm3467_vm5 = vcmask 1041408   ;;  %vm3468_vm6 = vcmask 1043456   ;;  %s2950_s8 = smov 120  }
  0x21   :  { %199 = vrot.lane.b32.xlu0 %v196_v2, %s2945_s0  ;;  %197 = vrot.lane.b32.xlu1 %v195_v3, %s2945_s0  ;;  %vm3464_vm7 = vcmask 31744   ;;  %v172_v40 = vld [vmem:[#allocation5 + $0x18] sm:$0xf]  ;;  %v2951_v53 = vmov 1.0   ;;  %v3501_v13 = vmov 0  ;;  %s2952_s9 = smov 126  }
  0x22   :  { %2627 = vmatpush3.msra.mxu0 %v196_v2  ;;  %v53_v15 = vmul.u32 64, %v3024_v14  ;;  %v76_v41 = vmul.u32 64, %v50_v17  ;;  %v75_v43 = vadd.s32 120, %v3024_v14  ;;  %v74_v45 = vadd.s32 112, %v3024_v14  ;;  %s2953_s10 = smov 2  }
  0x23   :  { %2628 = vmatprep.subr.mxu0 %v2942_v0  ;;  %v73_v46 = vadd.s32 104, %v3024_v14  ;;  %v72_v47 = vadd.s32 96, %v3024_v14  ;;  %v71_v51 = vadd.s32 88, %v3024_v14  ;;  %v70_v54 = vadd.s32 80, %v3024_v14 }
  0x24   :  { %2629 = vmatpush3.msra.mxu0 %v195_v3  ;;  %v54_v16 = vadd.s32 2, %v53_v15  ;;  %v3049_v42 = vadd.s32 2, %v76_v41  ;;  %v69_v57 = vadd.s32 72, %v3024_v14  ;;  %v68_v59 = vadd.s32 64, %v3024_v14 }
  0x25   :  { %202 = vrot.lane.b32.xlu0 %v169_v4, %s2946_s3  ;;  %351 = vrot.lane.b32.xlu1 %v196_v2, %s2947_s30  ;;  %v67_v61 = vadd.s32 56, %v3024_v14 }
  0x26   :  { %2640 = vmatprep.subr.mxu0 %v2942_v0  ;;  %v56_v18 = vadd.s32 16, %v54_v16  ;;  %vm55_vm2 = vcmp.ge.s32.totalorder %v50_v17, %v54_v16  ;;  %v3053_v44 = vadd.s32 16, %v3049_v42  ;;  %vm93_vm8 = vcmp.ge.s32.totalorder %v75_v43, %v3049_v42 }
  0x27   :  { %vm92_vm10 = vcmp.ge.s32.totalorder %v74_v45, %v3049_v42  ;;  %vm91_vm13 = vcmp.ge.s32.totalorder %v73_v46, %v3049_v42  ;;  %v3505_v16 = vmov 0 }
  0x28   :  { %vm57_vm3 = vcmp.lt.s32.totalorder %v50_v17, %v56_v18  ;;  %vm110_vm9 = vcmp.lt.s32.totalorder %v75_v43, %v3053_v44  ;;  %vm109_vm11 = vcmp.lt.s32.totalorder %v74_v45, %v3053_v44  ;;  %vm108_vm14 = vcmp.lt.s32.totalorder %v73_v46, %v3053_v44 }
  0x29   :  { %349 = vrot.lane.b32.xlu0 %v195_v3, %s2947_s30  ;;  %353 = vrot.lane.b32.xlu1 %v169_v4, %s2948_s6  ;;  %vm58_vm4 = vmand %vm55_vm2, %vm57_vm3  ;;  %vm107_vm2 = vcmp.lt.s32.totalorder %v72_v47, %v3053_v44  ;;  %v66_v3 = vadd.s32 48, %v3024_v14 }
  0x2a   :  { %v3028_v19 = vsel %vm58_vm4, 1.0, %v2942_v0  ;;  %vm3062_vm12 = vmand %vm93_vm8, %vm110_vm9  ;;  %vm89_vm4 = vcmp.ge.s32.totalorder %v71_v51, %v3049_v42  ;;  %vm106_vm8 = vcmp.lt.s32.totalorder %v71_v51, %v3053_v44 }
  0x2b   :  { %v160_v20 = vsel %vm3467_vm5, %v3028_v19, 0.0  ;;  %vm3074_vm15 = vmand %vm92_vm10, %vm109_vm11  ;;  %vm88_vm10 = vcmp.ge.s32.totalorder %v70_v54, %v3049_v42  ;;  %vm105_vm11 = vcmp.lt.s32.totalorder %v70_v54, %v3053_v44  ;;  %v178_v54 = vld [vmem:[#allocation5 + $0x48] sm:$0xf] }
  0x2c   :  { %v161_v21 = vrot.slane %v160_v20, 4  ;;  %vm3087_vm3 = vmand %vm91_vm13, %vm108_vm14  ;;  %vm87_vm14 = vcmp.ge.s32.totalorder %v69_v57, %v3049_v42 }
  0x2d   :  { %430 = vperm.xlu0 %2840, %v170_v5   ;;  %439 = vrot.lane.b32.xlu1 %v3020_v12, %s2949_s7  ;;  %vm3115_vm13 = vmand %vm89_vm4, %vm106_vm8  ;;  %vm86_vm4 = vcmp.ge.s32.totalorder %v68_v59, %v3049_v42  ;;  %vm103_vm8 = vcmp.lt.s32.totalorder %v68_v59, %v3053_v44  ;;  %v182_v59 = vld [vmem:[#allocation5 + $0x68] sm:$0xf] }
  0x2e   :  { %v162_v22 = vadd.f32 %v161_v21, %v160_v20 }
  0x30   :  { %v163_v23 = vrot.slane %v162_v22, 2 }
  0x32   :  { %v164_v26 = vadd.f32 %v163_v23, %v162_v22 }
  0x34   :  { %v165_v30 = vrot.slane %v164_v26, 1 }
  0x36   :  { %v3032_v35 = vadd.f32 %v165_v30, %v164_v26 }
  0x93   :  { %v200_v6 = vpop.permute.xlu0 %199  ;;  %v198_v7 = vpop.permute.xlu1 %197 }
  0x94   :  { %2634 = vmatpush3.msra.mxu1 %v200_v6  ;;  %v64_v6 = vadd.s32 32, %v3024_v14 }
  0x95   :  { %2635 = vmatprep.subr.mxu1 %v2942_v0 }
  0x96   :  { %2636 = vmatpush3.msra.mxu1 %v198_v7  ;;  %v3495_v7 = vmov 0 }
  0x97   :  { %v203_v8 = vpop.permute.xlu0 %202  ;;  %v352_v9 = vpop.permute.xlu1 %351  ;;  %2638 = vmatmul.mubr.msk.f32.vlgmr.msra.gmra.mxu1 %vm204_vm1, %v169_v4  ;;  %2647 = vmatprep.subr.mxu1 %v2942_v0  ;;  %v65_v4 = vadd.s32 40, %v3024_v14 }
  0x98   :  { %2631 = vmatmul.mubr.msk.f32.vlgmr.msra.gmra.mxu0 %vm204_vm1, %v203_v8  ;;  %2649 = vmatprep.mubr.msk.f32.mxu1 %vm3465_vm0, %v2942_v0  ;;  %v63_v8 = vadd.s32 24, %v3024_v14 }
  0x99   :  { %2641 = vmatpush3.msra.mxu0 %v352_v9  ;;  %2644 = vmatprep.mubr.msk.f32.mxu0 %vm3465_vm0, %v2942_v0  ;;  %v3497_v9 = vmov 0 }
  0x9a   :  { %2642 = vmatprep.subr.mxu0 %v2942_v0 }
  0x9b   :  { %v350_v10 = vpop.permute.xlu0 %349  ;;  %v354_v11 = vpop.permute.xlu1 %353 }
  0x9c   :  { %2643 = vmatpush3.msra.mxu0 %v350_v10  ;;  %v62_v10 = vadd.s32 16, %v3024_v14 }
  0x9d   :  { %2645 = vmatmul.mubr.msk.f32.vlgmr.msra.gmra.mxu0 %vm204_vm1, %v354_v11  ;;  %2652 = vmatprep.subr.mxu0 %v2942_v0  ;;  %vm90_vm1 = vcmp.ge.s32.totalorder %v72_v47, %v3049_v42  ;;  %v3499_v11 = vmov 0 }
  0x9e   :  { %2654 = vmatprep.mubr.msk.f32.mxu0 %vm3465_vm0, %v2942_v0  ;;  %vm3100_vm9 = vmand %vm90_vm1, %vm107_vm2  ;;  %vm104_vm1 = vcmp.lt.s32.totalorder %v69_v57, %v3053_v44  ;;  %v174_v57 = vld [vmem:[#allocation5 + $0x28] sm:$0xf] }
  0x9f   :  { %v440_v39 = vpop.permute.xlu1 %439  ;;  %vm3127_vm2 = vmand %vm88_vm10, %vm105_vm11  ;;  %vm85_vm10 = vcmp.ge.s32.totalorder %v67_v61, %v3049_v42  ;;  %vm102_vm11 = vcmp.lt.s32.totalorder %v67_v61, %v3053_v44  ;;  %v180_v61 = vld [vmem:[#allocation5 + $0x58] sm:$0xff] }
  0xa8   :  { %v431_v32 = vpop.permute.xlu0 %430 }
 0x157   :  { %v345_v24 = vpop.f32.mrf.mxu1 }
 0x158   :  { %v273_v25 = vpop.f32.mrf.mxu0 }
 0x159   :  { %v2639_v27 = vpop.f32.mrf.mxu1  ;;  %v346_v29 = vadd.f32 %v345_v24, %v273_v25 }
 0x15a   :  { %v2632_v28 = vpop.f32.mrf.mxu0 }
 0x15d   :  { %v423_v31 = vpop.f32.mrf.mxu0 }
 0x15e   :  { %v427_v33 = vadd.f32 %v423_v31, %v346_v29 }
 0x15f   :  { %v2646_v34 = vpop.f32.mrf.mxu0 }
 0x160   :  { %v433_v36 = vadd.f32 %v431_v32, %v427_v33 }
 0x162   :  { %v434_v37 = vmax.f32 %v433_v36, 0.0 }
 0x164   :  { %v3035_v38 = vmul.f32 %v434_v37, %v3032_v35 }
 0x166   :  { %593 = vrot.lane.b32.xlu0 %v3035_v38, %s2947_s30  ;;  %436 = vrot.lane.b32.xlu1 %v3035_v38, %s2945_s0 }
 0x167   :  { %2648 = vmatpush3.msk.msra.mxu1 %vm3468_vm6, %v3035_v38 }
 0x168   :  { %2650 = vmatmul.mubr.msk.f32.vlgmr.msra.gmra.mxu1 %vm3464_vm7, %v440_v39  ;;  %2657 = vmatprep.subr.mxu1 %v2942_v0 }
 0x169   :  { %2659 = vmatprep.mubr.msk.f32.mxu1 %vm3465_vm0, %v2942_v0 }
 0x16a   :  { %675 = vperm.xlu0 %2840, %v172_v40   ;;  %595 = vrot.lane.b32.xlu1 %v3020_v12, %s2950_s8 }
 0x1d8   :  { %v594_v48 = vpop.permute.xlu0 %593  ;;  %v437_v49 = vpop.permute.xlu1 %436 }
 0x1d9   :  { %2653 = vmatpush3.msk.msra.mxu0 %vm3468_vm6, %v437_v49  ;;  %2658 = vmatpush3.msk.msra.mxu1 %vm3468_vm6, %v594_v48 }
 0x1da   :  { %2655 = vmatmul.mubr.msk.f32.vlgmr.msra.gmra.mxu0 %vm3464_vm7, %v3020_v12  ;;  %2662 = vmatprep.subr.mxu0 %v2942_v0  ;;  %v61_v12 = vadd.s32 8, %v3024_v14 }
 0x1db   :  { %2663 = vmatpush3.msk.msra.mxu0 %vm3062_vm12, %v2951_v53  ;;  %2694 = vmatprep.mubr.msk.f32.mxu0 %vm3465_vm0, %v2942_v0 }
 0x1dc   :  { %v596_v55 = vpop.permute.xlu1 %595  ;;  %2664 = vmatprep.subr.mxu0 %v2942_v0  ;;  %2697 = vmatprep.subr.mxu1 %v2942_v0 }
 0x1dd   :  { %2660 = vmatmul.mubr.msk.f32.vlgmr.msra.gmra.mxu1 %vm3464_vm7, %v596_v55  ;;  %2665 = vmatpush3.msk.msra.mxu0 %vm3074_vm15, %v2951_v53  ;;  %vm3137_vm7 = vmand %vm87_vm14, %vm104_vm1  ;;  %vm84_vm1 = vcmp.ge.s32.totalorder %v66_v3, %v3049_v42  ;;  %v3270_v55 = vld [vmem:[#allocation5 + $0x60] sm:$0xf] }
 0x1de   :  { %2666 = vmatprep.subr.mxu0 %v2942_v0  ;;  %2698 = vmatpush3.msk.msra.mxu1 %vm3467_vm5, %v3028_v19  ;;  %vm3155_vm14 = vmand %vm85_vm10, %vm102_vm11  ;;  %vm83_vm10 = vcmp.ge.s32.totalorder %v65_v4, %v3049_v42  ;;  %vm100_vm11 = vcmp.lt.s32.totalorder %v65_v4, %v3053_v44 }
 0x1df   :  { %2667 = vmatpush3.msk.msra.mxu0 %vm3087_vm3, %v2951_v53  ;;  %2699 = vmatprep.mubr.msk.f32.mxu1 %vm3465_vm0, %v2942_v0  ;;  %vm3147_vm0 = vmand %vm86_vm4, %vm103_vm8  ;;  %vm101_vm4 = vcmp.lt.s32.totalorder %v66_v3, %v3053_v44 }
 0x1e0   :  { %2668 = vmatprep.subr.mxu0 %v2942_v0  ;;  %2702 = vmatprep.subr.mxu1 %v2942_v0  ;;  %vm3171_vm8 = vmand %vm84_vm1, %vm101_vm4  ;;  %vm82_vm1 = vcmp.ge.s32.totalorder %v64_v6, %v3049_v42  ;;  %vm99_vm4 = vcmp.lt.s32.totalorder %v64_v6, %v3053_v44 }
 0x1e1   :  { %2669 = vmatpush3.msk.msra.mxu0 %vm3100_vm9, %v2951_v53  ;;  %vm3182_vm5 = vmand %vm83_vm10, %vm100_vm11  ;;  %vm81_vm10 = vcmp.ge.s32.totalorder %v63_v8, %v3049_v42  ;;  %vm98_vm11 = vcmp.lt.s32.totalorder %v63_v8, %v3053_v44 }
 0x1e2   :  { %2670 = vmatprep.subr.mxu0 %v2942_v0  ;;  %v3496_v7 = vsel %vm3182_vm5, 4294967295, %v3495_v7  ;;  %vm3193_vm6 = vmand %vm82_vm1, %vm99_vm4  ;;  %vm80_vm1 = vcmp.ge.s32.totalorder %v62_v10, %v3049_v42  ;;  %vm97_vm4 = vcmp.lt.s32.totalorder %v62_v10, %v3053_v44 }
 0x1e3   :  { %2671 = vmatpush3.msk.msra.mxu0 %vm3115_vm13, %v2951_v53  ;;  %v3498_v9 = vsel %vm3193_vm6, 4294967295, %v3497_v9 }
 0x1e4   :  { %2672 = vmatprep.subr.mxu0 %v2942_v0 }
 0x1e5   :  { %2673 = vmatpush3.msk.msra.mxu0 %vm3127_vm2, %v2951_v53  ;;  %v676_v24 = vpop.permute.xlu0 %675 }
 0x1e6   :  { %2674 = vmatprep.subr.mxu0 %v2942_v0 }
 0x1e7   :  { %2675 = vmatpush3.msk.msra.mxu0 %vm3137_vm7, %v2951_v53 }
 0x1e8   :  { %2676 = vmatprep.subr.mxu0 %v2942_v0 }
 0x1e9   :  { %2677 = vmatpush3.msk.msra.mxu0 %vm3147_vm0, %v2951_v53 }
 0x1ea   :  { %2678 = vmatprep.subr.mxu0 %v2942_v0 }
 0x1eb   :  { %2679 = vmatpush3.msk.msra.mxu0 %vm3155_vm14, %v2951_v53 }
 0x1ec   :  { %2680 = vmatprep.subr.mxu0 %v2942_v0 }
 0x1ed   :  { %2681 = vmatpush3.msk.msra.mxu0 %vm3171_vm8, %v2951_v53 }
 0x1ee   :  { %2682 = vmatprep.subr.mxu0 %v2942_v0 }
 0x1ef   :  { %2683 = vmatpush3.msk.msra.mxu0 %vm3182_vm5, %v2951_v53  ;;  %vm3204_vm5 = vmand %vm81_vm10, %vm98_vm11  ;;  %vm79_vm10 = vcmp.ge.s32.totalorder %v61_v12, %v3049_v42  ;;  %vm96_vm11 = vcmp.lt.s32.totalorder %v61_v12, %v3053_v44 }
 0x1f0   :  { %2684 = vmatprep.subr.mxu0 %v2942_v0  ;;  %v3500_v11 = vsel %vm3204_vm5, 4294967295, %v3499_v11 }
 0x1f1   :  { %2685 = vmatpush3.msk.msra.mxu0 %vm3193_vm6, %v2951_v53  ;;  %vm3215_vm6 = vmand %vm80_vm1, %vm97_vm4  ;;  %vm78_vm1 = vcmp.ge.s32.totalorder %v3024_v14, %v3049_v42  ;;  %vm95_vm4 = vcmp.lt.s32.totalorder %v3024_v14, %v3053_v44  ;;  %v173_v42 = vld [vmem:[#allocation5 + $0x20] sm:$0xf] }
 0x1f2   :  { %2686 = vmatprep.subr.mxu0 %v2942_v0  ;;  %v3502_v13 = vsel %vm3215_vm6, 4294967295, %v3501_v13  ;;  %851 = vrot.lane.b32.xlu1 %v173_v42, %s2949_s7 }
 0x1f3   :  { %2687 = vmatpush3.msk.msra.mxu0 %vm3204_vm5, %v2951_v53  ;;  %vm3225_vm5 = vmand %vm79_vm10, %vm96_vm11  ;;  %vm3507_vm10 = vcmask 1043456   ;;  %vm3508_vm11 = vcmask 1041408  }
 0x1f4   :  { %2688 = vmatprep.subr.mxu0 %v2942_v0 }
 0x1f5   :  { %2689 = vmatpush3.msk.msra.mxu0 %vm3215_vm6, %v2951_v53  ;;  %vm3236_vm6 = vmand %vm78_vm1, %vm95_vm4  ;;  %vm3509_vm1 = vmmov 0   ;;  %vm3473_vm4 = vcmask 15360  }
 0x1f6   :  { %2690 = vmatprep.subr.mxu0 %v2942_v0  ;;  %v3506_v16 = vsel %vm3236_vm6, 4294967295, %v3505_v16 }
 0x1f7   :  { %2691 = vmatpush3.msk.msra.mxu0 %vm3225_vm5, %v2951_v53 }
 0x1f8   :  { %2692 = vmatprep.subr.mxu0 %v2942_v0 }
 0x1f9   :  { %2693 = vmatpush3.msk.msra.mxu0 %vm3236_vm6, %v2951_v53 }
 0x1fa   :  { %2752 = vmatprep.subr.mxu0 %v2942_v0 }
 0x228   :  { %v514_v17 = vpop.f32.mrf.mxu1 }
 0x22a   :  { %v2651_v18 = vpop.f32.mrf.mxu1 }
 0x264   :  { %v852_v51 = vpop.permute.xlu1 %851 }
 0x29a   :  { %v589_v20 = vpop.f32.mrf.mxu0 }
 0x29b   :  { %v590_v14 = vadd.f32 %v589_v20, %v514_v17 }
 0x29c   :  { %v2656_v21 = vpop.f32.mrf.mxu0 }
 0x29d   :  { %v668_v22 = vpop.f32.mrf.mxu1 }
 0x29e   :  { %v672_v23 = vadd.f32 %v668_v22, %v590_v14 }
 0x29f   :  { %v2661_v25 = vpop.f32.mrf.mxu1 }
 0x2a0   :  { %v678_v26 = vadd.f32 %v676_v24, %v672_v23 }
 0x2a2   :  { %v679_v27 = vmul.f32 %v678_v26, %v678_v26 }
 0x2a4   :  { %v681_v28 = vrot.slane %v679_v27, 4  ;;  %v175_v27 = vld [vmem:[#allocation5 + $0x30] sm:$0xff] }
 0x2a6   :  { %v683_v29 = vsel %vm3507_vm10, %v678_v26, %v681_v28 }
 0x2a7   :  { %2695 = vmatmul.mubr.f32.vlgmr.msra.gmra.mxu0 %v683_v29  ;;  %v3366_v29 = vld [vmem:[%s3460_s2] ss:$0 sm:$0xff] }
 0x2a8   :  { %2753 = vmatpush3.msk.msra.mxu0 %vm3508_vm11, %v3028_v19  ;;  %2754 = vmatprep.mubr.msk.f32.mxu0 %vm3509_vm1, %v2942_v0  ;;  %vm3510_vm11 = vmmov %vm3507_vm10 }
 0x2a9   :  { %2757 = vmatprep.subr.mxu0 %v2942_v0 }
 0x367   :  { %v750_v30 = vpop.f32.mrf.mxu0 }
 0x368   :  { %v754_v31 = vmul.f32 0.0625, %v750_v30 }
 0x369   :  { %v2696_v32 = vpop.f32.mrf.mxu0 }
 0x36a   :  { %v755_v33 = vmul.f32 %v754_v31, %v754_v31  ;;  %v177_v32 = vld [vmem:[#allocation5 + $0x40] sm:$0xf] }
 0x36c   :  { %v757_v34 = vrot.slane %v755_v33, 4 }
 0x36e   :  { %v759_v36 = vsub.f32 %v754_v31, %v757_v34  ;;  %v168_v34 = vld [vmem:[%s3459_s1] sm:$0x3f]  ;;  %s2954_s1 = smov [#allocation7]  }
 0x36f   :  { %s2419_s2 = sshll.u32 %s2954_s1, 4  ;;  %s2420_s2 = int_to_ptr.vmem [resolvable:$true] %s2419_s2 }
 0x370   :  { %v760_v37 = vmax.f32 %v759_v36, 0.0  ;;  %s2890_s15 = scalar_lea.vmem %s2420_s2, 128  ;;  %p2895_p11 = scmp.lt.s32.totalorder %s2420_s2, %s2420_s2 }
 0x371   :  { %p2891_p10 = scmp.ne.s32.totalorder %s2420_s2, %s2890_s15  ;;  %p2896_p12 = scmp.lt.s32.totalorder %s2890_s15, %s2890_s15 }
 0x372   :  { %v761_v39 = vadd.f32 1e-05, %v760_v37  ;;  %v179_v37 = vld [vmem:[#allocation5 + $0x50] sm:$0xff] }
 0x373   :  { %p2897_p13 = por %p2896_p12, %p2895_p11 }
 0x374   :  { %2842 = vrsqrt.f32 %v761_v39 }
 0x375   :  { %p2898_p0 = pnand %p2897_p13, %p2891_p10 }
 0x381   :  { %v2843_v40 = vpop.eup %2842 }
 0x382   :  { %v763_v41 = vsel %vm3507_vm10, %v754_v31, %v2843_v40  ;;  %vm3511_vm10 = vcmask 31744  }
 0x383   :  { %2700 = vmatmul.mubr.msk.f32.vlgmr.msra.gmra.mxu1 %vm3473_vm4, %v763_v41  ;;  %vm3512_vm4 = vmmov %vm3510_vm11 }
 0x384   :  { %2704 = vmatprep.mubr.msk.f32.mxu1 %vm3509_vm1, %v2942_v0  ;;  %vm3513_vm6 = vmmov %vm3511_vm10 }
 0x443   :  { %v837_v43 = vpop.f32.mrf.mxu1 }
 0x444   :  { %v841_v44 = vsub.f32 %v678_v26, %v837_v43  ;;  %v843_v45 = vrot.slane %v837_v43, 4 }
 0x445   :  { %v2701_v46 = vpop.f32.mrf.mxu1 }
 0x446   :  { %v845_v47 = vmul.f32 %v843_v45, %v841_v44 }
 0x448   :  { %v846_v48 = vmax.f32 %v845_v47, 0.0 }
 0x44a   :  { %v3257_v49 = vadd.f32 %v846_v48, %v3035_v38  ;;  %v176_v38 = vld [vmem:[#allocation5 + $0x38] sm:$0xff] }
 0x44c   :  { %1003 = vrot.lane.b32.xlu1 %v3257_v49, %s2952_s9  ;;  %848 = vrot.lane.b32.xlu0 %v3257_v49, %s2953_s10 }
 0x44d   :  { %2703 = vmatpush3.msk.msra.mxu1 %vm3510_vm11, %v3257_v49 }
 0x44e   :  { %2705 = vmatmul.mubr.msk.f32.vlgmr.msra.gmra.mxu1 %vm3511_vm10, %v852_v51  ;;  %2707 = vmatprep.subr.mxu1 %v2942_v0 }
 0x44f   :  { %2709 = vmatprep.mubr.msk.f32.mxu1 %vm3509_vm1, %v2942_v0 }
 0x450   :  { %1005 = vrot.lane.b32.xlu0 %v173_v42, %s2950_s8  ;;  %1085 = vperm.xlu1 %2841, %v174_v57  }
 0x454   :  { %1256 = vperm.xlu0 %2840, %v176_v38   ;;  %1426 = vperm.xlu1 %2841, %v180_v61  }
 0x458   :  { %1345 = vperm.xlu0 %2840, %v178_v54  }
 0x45c   :  { %1595 = vrot.lane.b32.xlu0 %v3270_v55, %s2949_s7 }
 0x460   :  { %1748 = vrot.lane.b32.xlu0 %v3270_v55, %s2950_s8 }
 0x464   :  { %1828 = vperm.xlu0 %2840, %v182_v59  }
 0x4be   :  { %v849_v3 = vpop.permute.xlu0 %848  ;;  %v1004_v4 = vpop.permute.xlu1 %1003 }
 0x4bf   :  { %2708 = vmatpush3.msk.msra.mxu1 %vm3510_vm11, %v849_v3  ;;  %vm3524_vm11 = vcmask 1041408  }
 0x4c0   :  { %2710 = vmatmul.mubr.msk.f32.vlgmr.msra.gmra.mxu1 %vm3511_vm10, %v173_v42  ;;  %2712 = vmatprep.subr.mxu1 %v2942_v0 }
 0x4c1   :  { %2713 = vmatpush3.msk.msra.mxu1 %vm3512_vm4, %v1004_v4  ;;  %2714 = vmatprep.mubr.msk.f32.mxu1 %vm3509_vm1, %v2942_v0 }
 0x4c2   :  { %v1006_v6 = vpop.permute.xlu0 %1005  ;;  %2717 = vmatprep.subr.mxu1 %v2942_v0 }
 0x4c4   :  { %2715 = vmatmul.mubr.msk.f32.vlgmr.msra.gmra.mxu1 %vm3513_vm6, %v1006_v6  ;;  %vm3514_vm6 = vnez %v3496_v7  ;;  %v186_v6 = vld [vmem:[#allocation5 + $0x88] sm:$0xff] }
 0x4c5   :  { %2718 = vmatpush3.msk.msra.mxu1 %vm3062_vm12, %v2951_v53  ;;  %2749 = vmatprep.mubr.msk.f32.mxu1 %vm3509_vm1, %v2942_v0  ;;  %vm3517_vm12 = vnez %v3502_v13 }
 0x4c6   :  { %2719 = vmatprep.subr.mxu1 %v2942_v0 }
 0x4c7   :  { %2720 = vmatpush3.msk.msra.mxu1 %vm3074_vm15, %v2951_v53  ;;  %vm3518_vm15 = vnez %v3506_v16 }
 0x4c8   :  { %2721 = vmatprep.subr.mxu1 %v2942_v0 }
 0x4c9   :  { %2722 = vmatpush3.msk.msra.mxu1 %vm3087_vm3, %v2951_v53  ;;  %vm3520_vm3 = vmmov %vm3512_vm4 }
 0x4ca   :  { %2723 = vmatprep.subr.mxu1 %v2942_v0 }
 0x4cb   :  { %2724 = vmatpush3.msk.msra.mxu1 %vm3100_vm9, %v2951_v53  ;;  %v1086_v1 = vpop.permute.xlu1 %1085  ;;  %vm3521_vm9 = vcmask 15360  }
 0x4cc   :  { %2725 = vmatprep.subr.mxu1 %v2942_v0 }
 0x4cd   :  { %2726 = vmatpush3.msk.msra.mxu1 %vm3115_vm13, %v2951_v53  ;;  %vm3522_vm13 = vmmov %vm3520_vm3 }
 0x4ce   :  { %2727 = vmatprep.subr.mxu1 %v2942_v0 }
 0x4cf   :  { %2728 = vmatpush3.msk.msra.mxu1 %vm3127_vm2, %v2951_v53  ;;  %vm3523_vm2 = vmmov %vm3511_vm10  ;;  %v1257_v28 = vpop.permute.xlu0 %1256  ;;  %v1427_v41 = vpop.permute.xlu1 %1426 }
 0x4d0   :  { %2729 = vmatprep.subr.mxu1 %v2942_v0  ;;  %vm3525_vm10 = vmmov %vm3521_vm9 }
 0x4d1   :  { %2730 = vmatpush3.msk.msra.mxu1 %vm3137_vm7, %v2951_v53  ;;  %vm3516_vm7 = vnez %v3500_v11 }
 0x4d2   :  { %2731 = vmatprep.subr.mxu1 %v2942_v0 }
 0x4d3   :  { %2732 = vmatpush3.msk.msra.mxu1 %vm3147_vm0, %v2951_v53  ;;  %vm3515_vm0 = vnez %v3498_v9  ;;  %v1346_v46 = vpop.permute.xlu0 %1345 }
 0x4d4   :  { %2733 = vmatprep.subr.mxu1 %v2942_v0 }
 0x4d5   :  { %2734 = vmatpush3.msk.msra.mxu1 %vm3155_vm14, %v2951_v53  ;;  %vm1348_vm14 = vcmask 64512  }
 0x4d6   :  { %2735 = vmatprep.subr.mxu1 %v2942_v0 }
 0x4d7   :  { %2736 = vmatpush3.msk.msra.mxu1 %vm3171_vm8, %v2951_v53  ;;  %vm1433_vm8 = vcmask 1045504   ;;  %v1596_v4 = vpop.permute.xlu0 %1595 }
 0x4d8   :  { %2737 = vmatprep.subr.mxu1 %v2942_v0 }
 0x4d9   :  { %2738 = vmatpush3.msk.msra.mxu1 %vm3514_vm6, %v2951_v53  ;;  %vm3526_vm6 = vmmov %vm3520_vm3 }
 0x4da   :  { %2739 = vmatprep.subr.mxu1 %v2942_v0 }
 0x4db   :  { %2740 = vmatpush3.msk.msra.mxu1 %vm3515_vm0, %v2951_v53  ;;  %vm3527_vm0 = vmmov %vm3523_vm2 }
 0x4dc   :  { %2741 = vmatprep.subr.mxu1 %v2942_v0 }
 0x4dd   :  { %2742 = vmatpush3.msk.msra.mxu1 %vm3516_vm7, %v2951_v53  ;;  %vm3528_vm7 = vmmov %vm3520_vm3 }
 0x4de   :  { %2743 = vmatprep.subr.mxu1 %v2942_v0 }
 0x4df   :  { %2744 = vmatpush3.msk.msra.mxu1 %vm3517_vm12, %v2951_v53  ;;  %vm3529_vm12 = vmmov %vm3527_vm0 }
 0x4e0   :  { %2745 = vmatprep.subr.mxu1 %v2942_v0 }
 0x4e1   :  { %2746 = vmatpush3.msk.msra.mxu1 %vm3225_vm5, %v2951_v53  ;;  %vm3519_vm5 = vmmov %vm3512_vm4  ;;  %vm1429_vm4 = vcmask 48128  }
 0x4e2   :  { %2747 = vmatprep.subr.mxu1 %v2942_v0 }
 0x4e3   :  { %2748 = vmatpush3.msk.msra.mxu1 %vm3518_vm15, %v2951_v53  ;;  %vm3530_vm15 = vmmov %vm3520_vm3 }
 0x4e4   :  { %2777 = vmatprep.subr.mxu1 %v2942_v0 }
 0x50e   :  { %v924_v50 = vpop.f32.mrf.mxu1 }
 0x510   :  { %v2706_v52 = vpop.f32.mrf.mxu1 }
 0x511   :  { %v185_v52 = vld [vmem:[#allocation5 + $0x80] sm:$0xff] }
 0x580   :  { %v999_v56 = vpop.f32.mrf.mxu1 }
 0x581   :  { %v1000_v60 = vadd.f32 %v999_v56, %v924_v50 }
 0x582   :  { %v2711_v58 = vpop.f32.mrf.mxu1 }
 0x583   :  { %v1749_v58 = vpop.permute.xlu0 %1748 }
 0x584   :  { %v1078_v62 = vpop.f32.mrf.mxu1 }
 0x585   :  { %v1082_v63 = vadd.f32 %v1078_v62, %v1000_v60 }
 0x586   :  { %v2716_v2 = vpop.f32.mrf.mxu1 }
 0x587   :  { %v1088_v5 = vadd.f32 %v1086_v1, %v1082_v63 }
 0x589   :  { %v1089_v7 = vmul.f32 %v1088_v5, %v1088_v5 }
 0x58b   :  { %v1091_v8 = vrot.slane %v1089_v7, 4 }
 0x58d   :  { %v1093_v9 = vsel %vm3519_vm5, %v1088_v5, %v1091_v8  ;;  %vm3531_vm5 = vmmov %vm3527_vm0  ;;  %v1829_v8 = vpop.permute.xlu0 %1828 }
 0x58e   :  { %2750 = vmatmul.mubr.f32.vlgmr.msra.gmra.mxu1 %v1093_v9 }
 0x58f   :  { %2779 = vmatprep.mubr.msk.f32.mxu1 %vm3509_vm1, %v2942_v0 }
 0x64e   :  { %v1160_v53 = vpop.f32.mrf.mxu1 }
 0x64f   :  { %v1164_v10 = vmul.f32 0.0625, %v1160_v53 }
 0x650   :  { %v2751_v11 = vpop.f32.mrf.mxu1 }
 0x651   :  { %v1165_v12 = vmul.f32 %v1164_v10, %v1164_v10 }
 0x653   :  { %v1167_v13 = vrot.slane %v1165_v12, 4 }
 0x655   :  { %v1169_v15 = vsub.f32 %v1164_v10, %v1167_v13 }
 0x657   :  { %v1170_v16 = vmax.f32 %v1169_v15, 0.0 }
 0x659   :  { %v1171_v17 = vadd.f32 1e-05, %v1170_v16 }
 0x65b   :  { %2844 = vrsqrt.f32 %v1171_v17 }
 0x668   :  { %v2845_v18 = vpop.eup %2844 }
 0x669   :  { %v1173_v20 = vsel %vm3520_vm3, %v1164_v10, %v2845_v18  ;;  %vm3532_vm3 = vmmov %vm3524_vm11 }
 0x66a   :  { %2755 = vmatmul.mubr.msk.f32.vlgmr.msra.gmra.mxu0 %vm3521_vm9, %v1173_v20 }
 0x66b   :  { %2759 = vmatprep.mubr.msk.f32.mxu0 %vm3509_vm1, %v2942_v0 }
 0x72a   :  { %v1243_v14 = vpop.f32.mrf.mxu0 }
 0x72b   :  { %v1247_v21 = vsub.f32 %v1088_v5, %v1243_v14  ;;  %v1249_v22 = vrot.slane %v1243_v14, 4 }
 0x72c   :  { %v2756_v23 = vpop.f32.mrf.mxu0 }
 0x72d   :  { %v1251_v24 = vmul.f32 %v1249_v22, %v1247_v21 }
 0x72f   :  { %v1252_v25 = vmax.f32 %v1251_v24, 0.0 }
 0x731   :  { %v1253_v26 = vadd.f32 %v1252_v25, %v3257_v49  ;;  %v183_v25 = vld [vmem:[#allocation5 + $0x70] sm:$0xf] }
 0x733   :  { %2758 = vmatpush3.msk.msra.mxu0 %vm3522_vm13, %v1253_v26  ;;  %vm3533_vm13 = vmmov %vm3526_vm6  ;;  %v1850_v26 = vrot.slane %v183_v25, 4 }
 0x734   :  { %2760 = vmatmul.mubr.msk.f32.vlgmr.msra.gmra.mxu0 %vm3523_vm2, %v175_v27  ;;  %2762 = vmatprep.subr.mxu0 %v2942_v0  ;;  %vm3534_vm2 = vmmov %vm3526_vm6 }
 0x735   :  { %2764 = vmatprep.mubr.msk.f32.mxu0 %vm3509_vm1, %v2942_v0 }
 0x7f4   :  { %v1331_v30 = vpop.f32.mrf.mxu0 }
 0x7f5   :  { %v1332_v31 = vadd.f32 %v1331_v30, %v1257_v28  ;;  %v184_v30 = vld [vmem:[#allocation5 + $0x78] sm:$0xf] }
 0x7f6   :  { %v2761_v33 = vpop.f32.mrf.mxu0 }
 0x7f7   :  { %v1341_v36 = vmul.f32 %v3366_v29, %v1332_v31  ;;  %2763 = vmatpush3.msra.mxu0 %v1332_v31  ;;  %v187_v31 = vld [vmem:[#allocation5 + $0x90] sm:$0xf] }
 0x7f8   :  { %2765 = vmatmul.mubr.msk.f32.vlgmr.msra.gmra.mxu0 %vm1348_vm14, %v177_v32  ;;  %2767 = vmatprep.subr.mxu0 %v2942_v0  ;;  %vm3535_vm14 = vmmov %vm3527_vm0 }
 0x7f9   :  { %1342 = vst [vmem:[#allocation7] sm:$0xff] %v1341_v36  ;;  %2768 = vmatpush3.msk.msra.mxu0 %vm1433_vm8, %v168_v34  ;;  %2769 = vmatprep.mubr.msk.f32.mxu0 %vm3509_vm1, %v2942_v0 }
 0x7fa   :  { %2772 = vmatprep.subr.mxu0 %v2942_v0 }
 0x7fc   :  { %2770 = vmatmul.mubr.msk.f32.vlgmr.msra.gmra.mxu0 %vm1429_vm4, %v179_v37 }
 0x7fd   :  { %2773 = vmatpush3.msk.msra.mxu0 %vm3524_vm11, %v3028_v19  ;;  %2774 = vmatprep.mubr.msk.f32.mxu0 %vm3509_vm1, %v2942_v0  ;;  %vm3538_vm11 = vmmov %vm3534_vm2 }
 0x7fe   :  { %2782 = vmatprep.subr.mxu0 %v2942_v0 }
 0x8b8   :  { %v1418_v39 = vpop.f32.mrf.mxu0 }
 0x8b9   :  { %v1419_v47 = vadd.f32 %v1418_v39, %v1346_v46 }
 0x8ba   :  { %v2766_v40 = vpop.f32.mrf.mxu0 }
 0x8bb   :  { %v1422_v48 = vmax.f32 %v1419_v47, 0.0 }
 0x8bc   :  { %v1503_v42 = vpop.f32.mrf.mxu0 }
 0x8bd   :  { %v1504_v43 = vadd.f32 %v1503_v42, %v1427_v41  ;;  %v1423_v49 = vmul.f32 %v1422_v48, %v3032_v35 }
 0x8be   :  { %v2771_v44 = vpop.f32.mrf.mxu0 }
 0x8bf   :  { %v1507_v45 = vmax.f32 %v1504_v43, 0.0  ;;  %v1582_v51 = vrot.slane %v1423_v49, 4 }
 0x8c1   :  { %2775 = vmatmul.mubr.msk.f32.vlgmr.msra.gmra.mxu0 %vm3525_vm10, %v1507_v45  ;;  %vm3539_vm10 = vmmov %vm3527_vm0 }
 0x8c2   :  { %2784 = vmatprep.mubr.msk.f32.mxu0 %vm3509_vm1, %v2942_v0 }
 0x981   :  { %v1577_v38 = vpop.f32.mrf.mxu0 }
 0x982   :  { %v1584_v54 = vmul.f32 %v1582_v51, %v1577_v38  ;;  %v1586_v57 = vrot.slane %v1577_v38, 4  ;;  %v188_v38 = vld [vmem:[#allocation5 + $0x98] sm:$0xf] }
 0x983   :  { %v2776_v59 = vpop.f32.mrf.mxu0 }
 0x984   :  { %v3387_v61 = vadd.f32 %v1586_v57, %v1584_v54 }
 0x986   :  { %v1590_v3 = vrot.slane %v3387_v61, 4 }
 0x988   :  { %1592 = vrot.lane.b32.xlu1 %v1590_v3, %s2953_s10  ;;  %2778 = vmatpush3.msk.msra.mxu1 %vm3526_vm6, %v1590_v3  ;;  %vm3541_vm6 = vmmov %vm3527_vm0 }
 0x989   :  { %2780 = vmatmul.mubr.msk.f32.vlgmr.msra.gmra.mxu1 %vm3527_vm0, %v1596_v4  ;;  %2787 = vmatprep.subr.mxu1 %v2942_v0 }
 0x98a   :  { %2789 = vmatprep.mubr.msk.f32.mxu1 %vm3509_vm1, %v2942_v0 }
 0x98c   :  { %1746 = vrot.lane.b32.xlu1 %v1590_v3, %s2952_s9 }
 0x990   :  { %1875 = vperm.xlu1 %2841, %v186_v6  }
 0x9fa   :  { %v1593_v50 = vpop.permute.xlu1 %1592 }
 0x9fb   :  { %2783 = vmatpush3.msk.msra.mxu0 %vm3528_vm7, %v1593_v50 }
 0x9fc   :  { %2785 = vmatmul.mubr.msk.f32.vlgmr.msra.gmra.mxu0 %vm3529_vm12, %v3270_v55  ;;  %2792 = vmatprep.subr.mxu0 %v2942_v0 }
 0x9fd   :  { %2793 = vmatpush3.msk.msra.mxu0 %vm1433_vm8, %v168_v34  ;;  %2794 = vmatprep.mubr.msk.f32.mxu0 %vm3509_vm1, %v2942_v0  ;;  %vm3536_vm8 = vmmov %vm3534_vm2 }
 0x9fe   :  { %v1747_v56 = vpop.permute.xlu1 %1746  ;;  %2802 = vmatprep.subr.mxu0 %v2942_v0 }
 0x9ff   :  { %2788 = vmatpush3.msk.msra.mxu1 %vm3530_vm15, %v1747_v56 }
 0xa00   :  { %2790 = vmatmul.mubr.msk.f32.vlgmr.msra.gmra.mxu1 %vm3531_vm5, %v1749_v58  ;;  %2795 = vmatmul.mubr.msk.f32.vlgmr.msra.gmra.mxu0 %vm1429_vm4, %v185_v52  ;;  %vm3537_vm4 = vmmov %vm3527_vm0 }
 0xa01   :  { %2797 = vmatprep.subr.mxu1 %v2942_v0  ;;  %2799 = vmatprep.mubr.msk.f32.mxu1 %vm3509_vm1, %v2942_v0  ;;  %vm3544_vm12 = vmmov %vm3537_vm4 }
 0xa02   :  { %2798 = vmatpush3.msk.msra.mxu1 %vm3532_vm3, %v3028_v19  ;;  %2804 = vmatprep.mubr.msk.f32.mxu0 %vm3509_vm1, %v2942_v0 }
 0xa03   :  { %2807 = vmatprep.subr.mxu1 %v2942_v0 }
 0xa0b   :  { %v1876_v1 = vpop.permute.xlu1 %1875 }
 0xa49   :  { %v1667_v55 = vpop.f32.mrf.mxu1 }
 0xa4b   :  { %v2781_v60 = vpop.f32.mrf.mxu1 }
 0xabc   :  { %v1742_v62 = vpop.f32.mrf.mxu0 }
 0xabd   :  { %v1743_v2 = vadd.f32 %v1742_v62, %v1667_v55 }
 0xabe   :  { %v2786_v63 = vpop.f32.mrf.mxu0 }
 0xac0   :  { %v1821_v5 = vpop.f32.mrf.mxu1  ;;  %v1947_v7 = vpop.f32.mrf.mxu0 }
 0xac1   :  { %v1825_v9 = vadd.f32 %v1821_v5, %v1743_v2  ;;  %v1948_v53 = vadd.f32 %v1947_v7, %v1876_v1 }
 0xac2   :  { %v2791_v10 = vpop.f32.mrf.mxu1  ;;  %v2796_v11 = vpop.f32.mrf.mxu0 }
 0xac3   :  { %v1831_v12 = vadd.f32 %v1829_v8, %v1825_v9  ;;  %v1951_v19 = vmax.f32 %v1948_v53, 0.0  ;;  %v189_v11 = vld [vmem:[#allocation5 + $0xa0] sm:$0xf] }
 0xac5   :  { %v1832_v13 = vmul.f32 %v1831_v12, %v3032_v35  ;;  %2800 = vmatmul.mubr.msk.f32.vlgmr.msra.gmra.mxu1 %vm3521_vm9, %v1951_v19 }
 0xac6   :  { %2809 = vmatprep.mubr.msk.f32.mxu1 %vm3509_vm1, %v2942_v0 }
 0xac7   :  { %v1833_v15 = vmul.f32 %v1832_v13, %v1832_v13 }
 0xac9   :  { %v1835_v16 = vrot.slane %v1833_v15, 4  ;;  %v190_v15 = vld [vmem:[#allocation5 + $0xa8] sm:$0xf] }
 0xacb   :  { %v1837_v17 = vsel %vm3533_vm13, %v1832_v13, %v1835_v16  ;;  %v193_v16 = vld [vmem:[#allocation5 + $0xc0] sm:$0xff] }
 0xacc   :  { %1838 = vadd.xlane.f32.xlu1 %v1837_v17  ;;  %v194_v17 = vld [vmem:[#allocation5 + $0xc8] sm:$0xff] }
 0xb55   :  { %v1839_v18 = vpop.xlane.xlu1 %1838 }
 0xb56   :  { %v1840_v20 = vmul.f32 0.03125, %v1839_v18  ;;  %v191_v18 = vld [vmem:[#allocation5 + $0xb0] sm:$0xff] }
 0xb58   :  { %v1841_v14 = vmul.f32 %v1840_v20, %v1840_v20  ;;  %v1853_v37 = vsub.f32 %v1831_v12, %v1840_v20  ;;  %v2291_v12 = vrot.slane %v189_v11, 4 }
 0xb5a   :  { %v1843_v21 = vrot.slane %v1841_v14, 4 }
 0xb5c   :  { %v1845_v22 = vsub.f32 %v1840_v20, %v1843_v21 }
 0xb5e   :  { %v1846_v23 = vmax.f32 %v1845_v22, 0.0 }
 0xb60   :  { %v1847_v24 = vadd.f32 1e-05, %v1846_v23 }
 0xb62   :  { %2846 = vrsqrt.f32 %v1847_v24 }
 0xb6f   :  { %v2847_v27 = vpop.eup %2846 }
 0xb70   :  { %v1852_v28 = vmul.f32 %v2847_v27, %v1850_v26 }
 0xb72   :  { %1856 = vperm.xlu0 %2840, %v1852_v28  }
 0xb76   :  { %1863 = vperm.xlu0 %2840, %v184_v30  }
 0xb7a   :  { %2036 = vrot.lane.b32.xlu0 %v187_v31, %s2949_s7 }
 0xb85   :  { %v2021_v32 = vpop.f32.mrf.mxu1 }
 0xb86   :  { %v2027_v46 = vrot.slane %v2021_v32, 4 }
 0xb87   :  { %v2801_v33 = vpop.f32.mrf.mxu1 }
 0xbed   :  { %v1857_v34 = vpop.permute.xlu0 %1856 }
 0xbee   :  { %v1858_v36 = vrot.slane %v1857_v34, 4 }
 0xbf0   :  { %v1860_v39 = vmul.f32 %v1858_v36, %v1853_v37 }
 0xbf1   :  { %v1864_v40 = vpop.permute.xlu0 %1863 }
 0xbf2   :  { %v1866_v41 = vadd.f32 %v1864_v40, %v1860_v39 }
 0xbf4   :  { %v1867_v42 = vmax.f32 %v1866_v41, 0.0 }
 0xbf5   :  { %v2037_v51 = vpop.permute.xlu0 %2036 }
 0xbf6   :  { %v1869_v43 = vrot.slane %v1867_v42, 4 }
 0xbf8   :  { %v1871_v44 = vadd.f32 %v1869_v43, %v3387_v61 }
 0xbfa   :  { %v1872_v45 = vmul.f32 %v1871_v44, %v3032_v35 }
 0xbfc   :  { %v2025_v47 = vmul.f32 %v2021_v32, %v1872_v45 }
 0xbfe   :  { %v3424_v48 = vadd.f32 %v2027_v46, %v2025_v47 }
 0xc00   :  { %v2031_v49 = vrot.slane %v3424_v48, 4 }
 0xc02   :  { %2033 = vrot.lane.b32.xlu0 %v2031_v49, %s2945_s0  ;;  %2803 = vmatpush3.msk.msra.mxu0 %vm3534_vm2, %v2031_v49 }
 0xc03   :  { %2805 = vmatmul.mubr.msk.f32.vlgmr.msra.gmra.mxu0 %vm3535_vm14, %v2037_v51  ;;  %2812 = vmatprep.subr.mxu0 %v2942_v0 }
 0xc04   :  { %2814 = vmatprep.mubr.msk.f32.mxu0 %vm3509_vm1, %v2942_v0  ;;  %vm3540_vm1 = vmmov %vm3534_vm2 }
 0xc05   :  { %vm3542_vm0 = vmmov %vm3540_vm1 }
 0xc06   :  { %2187 = vrot.lane.b32.xlu0 %v2031_v49, %s2947_s30  ;;  %vm3543_vm7 = vmmov %vm3542_vm0 }
 0xc0a   :  { %2189 = vrot.lane.b32.xlu0 %v187_v31, %s2950_s8 }
 0xc0e   :  { %2269 = vperm.xlu0 %2840, %v188_v38  }
 0xc74   :  { %v2034_v54 = vpop.permute.xlu0 %2033 }
 0xc75   :  { %2808 = vmatpush3.msk.msra.mxu1 %vm3536_vm8, %v2034_v54 }
 0xc76   :  { %2810 = vmatmul.mubr.msk.f32.vlgmr.msra.gmra.mxu1 %vm3537_vm4, %v187_v31  ;;  %v192_v31 = vld [vmem:[#allocation5 + $0xb8] sm:$0xff] }
 0xc77   :  { %2819 = vmatprep.mubr.msk.f32.mxu1 %vm3541_vm6, %v191_v18 }
 0xc78   :  { %v2188_v57 = vpop.permute.xlu0 %2187 }
 0xc79   :  { %2813 = vmatpush3.msk.msra.mxu0 %vm3538_vm11, %v2188_v57 }
 0xc7c   :  { %v2190_v59 = vpop.permute.xlu0 %2189 }
 0xc7d   :  { %2815 = vmatmul.mubr.msk.f32.vlgmr.msra.gmra.mxu0 %vm3539_vm10, %v2190_v59 }
 0xc89   :  { %v2270_v56 = vpop.permute.xlu0 %2269 }
 0xcc3   :  { %v2108_v61 = vpop.f32.mrf.mxu0 }
 0xcc5   :  { %v2806_v3 = vpop.f32.mrf.mxu0 }
 0xd36   :  { %v2183_v0 = vpop.f32.mrf.mxu1 }
 0xd37   :  { %v2184_v6 = vadd.f32 %v2183_v0, %v2108_v61 }
 0xd38   :  { %v2811_v4 = vpop.f32.mrf.mxu1 }
 0xd3d   :  { %v2262_v50 = vpop.f32.mrf.mxu0 }
 0xd3e   :  { %v2266_v52 = vadd.f32 %v2262_v50, %v2184_v6 }
 0xd3f   :  { %v2816_v58 = vpop.f32.mrf.mxu0 }
 0xd40   :  { %v2272_v55 = vadd.f32 %v2270_v56, %v2266_v52 }
 0xd42   :  { %v2273_v60 = vmul.f32 %v2272_v55, %v3032_v35 }
 0xd44   :  { %v2274_v62 = vmul.f32 %v2273_v60, %v2273_v60 }
 0xd46   :  { %v2276_v63 = vrot.slane %v2274_v62, 4 }
 0xd48   :  { %v2278_v1 = vsel %vm3540_vm1, %v2273_v60, %v2276_v63 }
 0xd49   :  { %2279 = vadd.xlane.f32.xlu0 %v2278_v1 }
 0xdd2   :  { %v2280_v2 = vpop.xlane.xlu0 %2279 }
 0xdd3   :  { %v2281_v5 = vmul.f32 0.03125, %v2280_v2 }
 0xdd5   :  { %v2282_v7 = vmul.f32 %v2281_v5, %v2281_v5  ;;  %v2294_v14 = vsub.f32 %v2272_v55, %v2281_v5 }
 0xdd7   :  { %v2284_v8 = vrot.slane %v2282_v7, 4 }
 0xdd9   :  { %v2286_v9 = vsub.f32 %v2281_v5, %v2284_v8 }
 0xddb   :  { %v2287_v53 = vmax.f32 %v2286_v9, 0.0 }
 0xddd   :  { %v2288_v10 = vadd.f32 1e-05, %v2287_v53 }
 0xddf   :  { %2848 = vrsqrt.f32 %v2288_v10 }
 0xdec   :  { %v2849_v19 = vpop.eup %2848 }
 0xded   :  { %v2293_v13 = vmul.f32 %v2849_v19, %v2291_v12 }
 0xdef   :  { %2297 = vperm.xlu1 %2841, %v2293_v13  }
 0xdf3   :  { %2304 = vperm.xlu1 %2841, %v190_v15  }
 0xdf7   :  { %2316 = vperm.xlu1 %2841, %v193_v16  }
 0xdfb   :  { %2321 = vperm.xlu1 %2841, %v194_v17  }
 0xe6a   :  { %v2298_v20 = vpop.permute.xlu1 %2297 }
 0xe6b   :  { %v2299_v21 = vrot.slane %v2298_v20, 4 }
 0xe6d   :  { %v2301_v22 = vmul.f32 %v2299_v21, %v2294_v14 }
 0xe6e   :  { %v2305_v23 = vpop.permute.xlu1 %2304 }
 0xe6f   :  { %v2307_v24 = vadd.f32 %v2305_v23, %v2301_v22 }
 0xe71   :  { %v2308_v25 = vmax.f32 %v2307_v24, 0.0 }
 0xe73   :  { %v2310_v26 = vrot.slane %v2308_v25, 4 }
 0xe75   :  { %v2312_v27 = vadd.f32 %v2310_v26, %v3424_v48 }
 0xe77   :  { %v2313_v28 = vmul.f32 %v2312_v27, %v3032_v35 }
 0xe79   :  { %v2325_v30 = vrot.slane %v2313_v28, 4 }
 0xe7b   :  { %2817 = vmatprep.subr.msk.mxu1 %vm3542_vm0, %v2325_v30 }
 0xe7c   :  { %2818 = vmatpush3.msk.msra.mxu1 %vm3543_vm7, %v2325_v30 }
 0xe7d   :  { %2820 = vmatmul.mubr.msk.f32.vlgmr.msra.gmra.mxu1 %vm3544_vm12, %v192_v31 }
 0xe7e   :  { %2901 = shalt.err (!%p2898_p0)
}
 0xe7f   :  { %2422 = dma.vmem_to_hbm [thread:$0]  %s2420_s2, 128, %s3462_s4, [#allocation4]   ;;  %v2317_v35 = vpop.permute.xlu1 %2316 }
 0xe80   :  { %s2955_s18 = smov [#allocation8]  }
 0xe81   :  { %s2428_s19 = sshll.u32 %s2955_s18, 4  ;;  %s2429_s19 = int_to_ptr.vmem [resolvable:$true] %s2428_s19 }
 0xe82   :  { %s2910_s20 = scalar_lea.vmem %s2429_s19, 256  ;;  %p2915_p2 = scmp.lt.s32.totalorder %s2429_s19, %s2429_s19 }
 0xe83   :  { %v2322_v32 = vpop.permute.xlu1 %2321  ;;  %p2911_p1 = scmp.ne.s32.totalorder %s2429_s19, %s2910_s20  ;;  %p2916_p3 = scmp.lt.s32.totalorder %s2910_s20, %s2910_s20 }
 0xe85   :  { %p2917_p4 = por %p2916_p3, %p2915_p2 }
 0xe87   :  { %p2918_p5 = pnand %p2917_p4, %p2911_p1 }
 0xf3d   :  { %v2821_v33 = vpop.f32.mrf.mxu1 }
 0xf3e   :  { %v2406_v34 = vadd.f32 %v2821_v33, %v2322_v32 }
 0xf3f   :  { %v2400_v36 = vpop.f32.mrf.mxu1 }
 0xf40   :  { %v2410_v37 = vmul.f32 %v3366_v29, %v2406_v34  ;;  %v2401_v39 = vadd.f32 %v2400_v36, %v2317_v35 }
 0xf42   :  { %2412 = vst [vmem:[#allocation8 + $0x8] sm:$0xff] %v2410_v37  ;;  %v2409_v40 = vmul.f32 %v3366_v29, %v2401_v39 }
 0xf44   :  { %2411 = vst [vmem:[#allocation8] sm:$0xff] %v2409_v40 }
 0xf45   :  { %2921 = shalt.err (!%p2918_p5)
}
 0xf46   :  { %2434 = dma.vmem_to_hbm [thread:$0]  %s2429_s19, 256, %s3463_s5, [#allocation9], %s2939_s21, %s2939_s21, %s2940_s22  }
 0xf47   :  { %2934 = dma.done.wait [#allocation4], 128  }
 0xf48   :  { %2935 = vsyncadd [#allocation4], 4294967168 }
 0xf49   :  { %2936 = dma.done.wait [#allocation9], 256  }
 0xf4a   :  { %2937 = vsyncadd [#allocation9], 4294967040 }
 0xf4b   :  { %2441 = vsyncpa [#allocation3], 1 }
 0xf4c   :  { %2442 = vsyncpa [#allocation6], 1 }
 0xf4d   :  { %2443 = vsyncpa [#allocation4], 1 }
 0xf4e   :  { %2444 = vsyncpa [#allocation9], 1 }

</bundles_post_ra>
